<compile_context>
chip_gen: v5e
topology: v5e:2x2
jax: 0.10.0
libtpu: 0.0.40
codegen_flags: <defaults>
</compile_context>

<pallas_src>
import numpy as np
import jax
import jax.numpy as jnp
from jax import lax
from jax.experimental import pallas as pl
from jax.experimental.pallas import tpu as pltpu

EPS = 1e-5


# ----------------------------------------------------------------------------
# Fused whole-block kernel (closure over the static channel/offset config)
# ----------------------------------------------------------------------------
def _make_dense_block_kernel(cfg, H):
    W = cfg['W']
    c_final = cfg['c_final']
    c0 = cfg['c0']
    CFW = c_final * W
    has_fc = cfg['has_first_conv']
    layers = cfg['layers']
    n_layers = len(layers)

    def kernel(*refs):
        it = iter(refs)
        x_ref = next(it)
        wfc_ref = next(it) if has_fc else None
        layer_refs = [tuple(next(it) for _ in range(6)) for _ in range(n_layers)]
        out_ref = next(it)

        M = x_ref.shape[0]                         # = batch_tile * H rows
        # Per-image row index for the 3x3 top/bottom boundary masks.
        row = lax.broadcasted_iota(jnp.int32, (M, 1), 0) % H
        not_top = (row != 0).astype(jnp.float32)       # zero on h == 0 rows
        not_bot = (row != (H - 1)).astype(jnp.float32)  # zero on h == H-1 rows

        # ---- stage 0: first_conv (plain 1x1, no BN/act) or passthrough -------
        x0_off = (c_final - c0) * W
        if has_fc:
            out_ref[:, x0_off:CFW] = jnp.dot(
                x_ref[...].astype(jnp.bfloat16), wfc_ref[...],
                preferred_element_type=jnp.float32)
        else:
            out_ref[:, x0_off:CFW] = x_ref[...].astype(jnp.float32)

        # ---- dense layers: read trailing lane slice, write own growth slab ---
        for l in range(n_layers):
            s1_ref, t1_ref, w1_ref, s2_ref, t2_ref, w2_ref = layer_refs[l]
            lcfg = layers[l]
            in_off = lcfg['in_off'] * W
            out_off = lcfg['out_off'] * W
            coutW = lcfg['cout'] * W

            xin = out_ref[:, in_off:CFW]                       # (M, Cin_l*W) f32
            # BN1 affine + ReLU (f32, full lanes busy).
            a1 = jnp.maximum(xin * s1_ref[...] + t1_ref[...], 0.0)
            # Grouped 1x1 conv + output permutation: one block-diagonal matmul.
            y1 = jnp.dot(a1.astype(jnp.bfloat16), w1_ref[...],
                         preferred_element_type=jnp.float32)   # (M, Cb*W)
            # BN2 affine (kept f32 in the epilogue) + ReLU.
            a2 = jnp.maximum(y1 * s2_ref[...] + t2_ref[...], 0.0).astype(jnp.bfloat16)
            # 3x3 conv: single matmul against the 3 dy-bands (dx shifts + W zero
            # padding folded into the bands), combine dy=+-1 with sublane rolls.
            y3 = jnp.dot(a2, w2_ref[...],
                         preferred_element_type=jnp.float32)   # (M, 3*Cout*W)
            y_up = y3[:, 0:coutW]                # dy=0 band: uses input row h-1
            y_mid = y3[:, coutW:2 * coutW]       # dy=1 band: same row
            y_dn = y3[:, 2 * coutW:3 * coutW]    # dy=2 band: uses input row h+1
            acc = y_mid
            acc = acc + not_top * pltpu.roll(y_up, shift=1, axis=0)
            acc = acc + not_bot * pltpu.roll(y_dn, shift=M - 1, axis=0)
            out_ref[:, out_off:out_off + coutW] = acc

    return kernel


# ----------------------------------------------------------------------------
# Parameter construction (mirrors the PyTorch __init__/initialize) + folding
# ----------------------------------------------------------------------------
def init_dense_block_params(key, in_channels, growth_rates, bottleneck,
                            bottleneck_style, groups, reduce_input, W):
    """Returns (raw, folded).

    raw    : PyTorch-equivalent per-layer weights / BN stats (reference path).
    folded : channel-major (lane = c*W + w) block-diagonal / banded bf16 matmul
             weights + f32 BN affine vectors for the fused kernel, plus the
             static channel-offset config (specialized to spatial width W).
    """
    keys = jax.random.split(key, 1 + 2 * len(growth_rates))
    raw = {'first_conv_w': None, 'layers': []}
    folded = {'first_conv': None, 'layers': []}
    eyeW = np.eye(W, dtype=np.float32)

    if reduce_input:
        c0 = growth_rates[0]
        wfc = (np.asarray(jax.random.normal(keys[0], (c0, in_channels), jnp.float32))
               * np.sqrt(2.0 / in_channels)).astype(np.float32)   # kaiming, fan_in=Cin
        raw['first_conv_w'] = jnp.asarray(wfc)                    # (C0, Cin) 1x1 kernel
        folded['first_conv'] = jnp.asarray(np.kron(wfc.T, eyeW), jnp.bfloat16)
        block_in = c0
    else:
        c0 = in_channels
        block_in = in_channels

    c_final = block_in + int(sum(growth_rates))
    layer_cfgs = []
    in_off = c_final - block_in   # channel offset of this layer's input in the final buffer

    for li, growth in enumerate(growth_rates):
        cin, cout = block_in, growth
        if bottleneck_style == 'out':
            cb = int(bottleneck * cout)
        elif bottleneck_style == 'in':
            cb = int(bottleneck * cin)
        else:
            raise RuntimeError(f'unknown bottleneck_style={bottleneck_style}')

        nb_group1 = 1
        if groups is not None and groups > 1:
            for grp in range(groups, 0, -1):
                if cin % grp == 0 and cb % grp == 0:
                    nb_group1 = grp
                    break
        cin_g, cb_g = cin // nb_group1, cb // nb_group1

        k1, k2 = keys[1 + 2 * li], keys[2 + 2 * li]
        w1 = (np.asarray(jax.random.normal(k1, (cb, cin_g), jnp.float32))
              * np.sqrt(2.0 / cin_g)).astype(np.float32)             # (Cb, Cin/g)
        w2 = (np.asarray(jax.random.normal(k2, (cout, cb, 3, 3), jnp.float32))
              * np.sqrt(2.0 / (cb * 9))).astype(np.float32)          # (Cout, Cb, 3, 3)
        perm = (np.transpose(np.reshape(np.arange(cb), (nb_group1, -1))).flatten()
                if nb_group1 > 1 else None)

        # BatchNorm params as initialized (eval-mode running stats).
        bn1 = dict(gamma=np.ones(cin, np.float32), beta=np.zeros(cin, np.float32),
                   mean=np.zeros(cin, np.float32), var=np.ones(cin, np.float32))
        bn2 = dict(gamma=np.ones(cb, np.float32), beta=np.zeros(cb, np.float32),
                   mean=np.zeros(cb, np.float32), var=np.ones(cb, np.float32))

        raw['layers'].append(dict(
            w1=jnp.asarray(w1), w2=jnp.asarray(w2), groups=nb_group1, perm=perm,
            bn1={k: jnp.asarray(v) for k, v in bn1.items()},
            bn2={k: jnp.asarray(v) for k, v in bn2.items()},
            cin=cin, cb=cb, cout=cout))

        # ---- fold for the fused kernel (channel-major lane layout) ----------
        s1 = bn1['gamma'] / np.sqrt(bn1['var'] + EPS)
        t1 = bn1['beta'] - bn1['mean'] * s1
        s2 = bn2['gamma'] / np.sqrt(bn2['var'] + EPS)
        t2 = bn2['beta'] - bn2['mean'] * s2
        # grouped 1x1 conv -> dense (Cin, Cb) + output-channel permutation.
        w1_dense = np.zeros((cin, cb), np.float32)
        for g in range(nb_group1):
            w1_dense[g * cin_g:(g + 1) * cin_g, g * cb_g:(g + 1) * cb_g] = \
                w1[g * cb_g:(g + 1) * cb_g].T
        if perm is not None:
            w1_dense = w1_dense[:, perm]
        w1_big = np.kron(w1_dense, eyeW)                              # (Cin*W, Cb*W)
        # 3x3 conv: per-dy band (dx shift + W zero-padding folded in), concatenated
        # along the output lanes -> single matmul weight (Cb*W, 3*Cout*W).
        bands = []
        for dy in range(3):
            band = np.zeros((cb * W, cout * W), np.float32)
            for dx in range(3):
                band += np.kron(w2[:, :, dy, dx].T,
                                np.eye(W, k=1 - dx, dtype=np.float32))
            bands.append(band)
        w2_cat = np.concatenate(bands, axis=1)

        folded['layers'].append(dict(
            s1=jnp.asarray(np.repeat(s1, W)[None, :].astype(np.float32)),
            t1=jnp.asarray(np.repeat(t1, W)[None, :].astype(np.float32)),
            w1=jnp.asarray(w1_big, jnp.bfloat16),
            s2=jnp.asarray(np.repeat(s2, W)[None, :].astype(np.float32)),
            t2=jnp.asarray(np.repeat(t2, W)[None, :].astype(np.float32)),
            w2=jnp.asarray(w2_cat, jnp.bfloat16)))
        layer_cfgs.append(dict(cin=cin, cb=cb, cout=cout,
                               in_off=in_off, out_off=in_off - cout))
        in_off -= cout
        block_in += growth

    folded['cfg'] = dict(W=W, c_final=c_final, c0=c0,
                         has_first_conv=bool(reduce_input), layers=layer_cfgs)
    return raw, folded


# ----------------------------------------------------------------------------
# Wrapper (jit this; `folded` is captured by closure so sizes stay static)
# ----------------------------------------------------------------------------
def dense_block_forward(x_nchw, folded):
    cfg = folded['cfg']
    N, Cin, H, W = x_nchw.shape
    assert W == cfg['W']
    c_final = cfg['c_final']
    CFW = c_final * W

    # NCHW -> (N*H, Cin*W) channel-major lane layout (lane = c*W + w): the dense
    # concat becomes contiguous lanes and batch folds into the matmul M dim.
    # TODO(synk): skip these tiny entry/exit relayouts if the surrounding model
    # already provides / consumes channel-last activations.
    x_cm = jnp.transpose(x_nchw, (0, 2, 1, 3)).reshape(N * H, Cin * W).astype(jnp.float32)

    # Whole batch in one grid step (M = N*H): single launch, single HBM write.
    # TODO(synk): for large N, tile the batch over a parallel grid axis (>=2
    # steps) so both v7x TensorCores are used.
    M = N * H

    operands = [x_cm]
    in_specs = [pl.BlockSpec((M, Cin * W), lambda i: (i, 0))]
    if folded['first_conv'] is not None:
        wfc = folded['first_conv']
        operands.append(wfc)
        in_specs.append(pl.BlockSpec(wfc.shape, lambda i: (0, 0)))
    for lf in folded['layers']:
        for name in ('s1', 't1', 'w1', 's2', 't2', 'w2'):
            arr = lf[name]
            operands.append(arr)
            in_specs.append(pl.BlockSpec(arr.shape, lambda i: (0, 0)))

    y_cm = pl.pallas_call(
        _make_dense_block_kernel(cfg, H),
        out_shape=jax.ShapeDtypeStruct((N * H, CFW), jnp.float32),
        grid=(N * H // M,),
        in_specs=in_specs,
        out_specs=pl.BlockSpec((M, CFW), lambda i: (i, 0)),
        compiler_params=pltpu.CompilerParams(
            dimension_semantics=("arbitrary",),
            vmem_limit_bytes=32 * 1024 * 1024),
    )(*operands)

    # (N*H, C_final*W) -> NCHW (one small XLA relayout of the final output only).
    return y_cm.reshape(N, H, c_final, W).transpose(0, 2, 1, 3)


# ----------------------------------------------------------------------------
# Pure-JAX f32 reference (unfolded math, lax.conv) for validation
# ----------------------------------------------------------------------------
def _bn_relu_ref(x, bn):
    inv = bn['gamma'] * jax.lax.rsqrt(bn['var'] + EPS)
    return jnp.maximum((x - bn['mean']) * inv + bn['beta'], 0.0)


def reference_forward(x_nchw, raw):
    x = jnp.transpose(x_nchw, (0, 2, 3, 1)).astype(jnp.float32)
    if raw['first_conv_w'] is not None:
        x = jnp.einsum('nhwc,oc->nhwo', x, raw['first_conv_w'],
                       precision=lax.Precision.HIGHEST)
    for lay in raw['layers']:
        a1 = _bn_relu_ref(x, lay['bn1'])
        g, cin, cb = lay['groups'], lay['cin'], lay['cb']
        cin_g, cb_g = cin // g, cb // g
        parts = []
        for gi in range(g):
            ag = a1[..., gi * cin_g:(gi + 1) * cin_g]
            wg = lay['w1'][gi * cb_g:(gi + 1) * cb_g]                 # (cb_g, cin_g)
            parts.append(jnp.einsum('nhwc,oc->nhwo', ag, wg,
                                    precision=lax.Precision.HIGHEST))
        y1 = jnp.concatenate(parts, axis=-1)
        if lay['perm'] is not None:
            y1 = y1[..., lay['perm']]
        a2 = _bn_relu_ref(y1, lay['bn2'])
        w2_hwio = jnp.transpose(lay['w2'], (2, 3, 1, 0))              # (3,3,Cb,Cout)
        yc = lax.conv_general_dilated(
            a2, w2_hwio, window_strides=(1, 1), padding=((1, 1), (1, 1)),
            dimension_numbers=('NHWC', 'HWIO', 'NHWC'),
            precision=lax.Precision.HIGHEST)
        x = jnp.concatenate([yc, x], axis=-1)
    return jnp.transpose(x, (0, 3, 1, 2))


if __name__ == "__main__":
    key = jax.random.PRNGKey(0)
    k_param, k_x = jax.random.split(key)

    # DenseBlock(in_channels=4, bottleneck=2.0, bottleneck_style='out',
    #            growth_rates=(8, 8), activation=ReLU, groups=2,
    #            dropout=None, reduce_input=True)
    # TODO(synk): activation is fixed to ReLU (as in this config); other
    # activation modules would need their own elementwise lowering.
    IN_CH, GROWTH, BOTTLENECK, STYLE, GROUPS = 4, (8, 8), 2.0, 'out', 2
    N, H, W = 2, 16, 16

    raw, folded = init_dense_block_params(
        k_param, IN_CH, GROWTH, BOTTLENECK, STYLE, GROUPS,
        reduce_input=True, W=W)

    x = jax.random.normal(k_x, (N, IN_CH, H, W), dtype=jnp.float32)

    fwd = jax.jit(lambda inp: dense_block_forward(inp, folded))
    out = jax.block_until_ready(fwd(x))
    ref = jax.block_until_ready(reference_forward(x, raw))

    c_final = GROWTH[0] + sum(GROWTH)     # reduce_input=True: C0 + sum(growth)
    assert out.shape == (N, c_final, H, W), out.shape
    max_err = float(jnp.max(jnp.abs(out - ref)))
    # bf16 matmul operands with f32 accumulation over two stacked layers.
    assert jnp.allclose(out, ref, atol=5e-2, rtol=5e-2), max_err
    print("KERNEL_OK")
</pallas_src>

<mosaic_0001>
module attributes {stable_mosaic.version = 11 : i64} {
  func.func @kernel(%arg0: i32, %arg1: memref<32x64xf32, #tpu.memory_space<vmem>>, %arg2: memref<64x128xbf16, #tpu.memory_space<vmem>>, %arg3: memref<1x128xf32, #tpu.memory_space<vmem>>, %arg4: memref<1x128xf32, #tpu.memory_space<vmem>>, %arg5: memref<128x256xbf16, #tpu.memory_space<vmem>>, %arg6: memref<1x256xf32, #tpu.memory_space<vmem>>, %arg7: memref<1x256xf32, #tpu.memory_space<vmem>>, %arg8: memref<256x384xbf16, #tpu.memory_space<vmem>>, %arg9: memref<1x256xf32, #tpu.memory_space<vmem>>, %arg10: memref<1x256xf32, #tpu.memory_space<vmem>>, %arg11: memref<256x256xbf16, #tpu.memory_space<vmem>>, %arg12: memref<1x256xf32, #tpu.memory_space<vmem>>, %arg13: memref<1x256xf32, #tpu.memory_space<vmem>>, %arg14: memref<256x384xbf16, #tpu.memory_space<vmem>>, %arg15: memref<32x384xf32, #tpu.memory_space<vmem>>) attributes {dimension_semantics = [#tpu.dimension_semantics<arbitrary>], iteration_bounds = array<i64: 1>, scalar_prefetch = 0 : i64, scratch_operands = 0 : i64, tpu.core_type = #tpu.core_type<tc>, window_params = [{transform_indices = @transform_0, window_bounds = array<i64: 32, 64>}, {pipeline_mode = #tpu.pipeline_mode<synchronous>, transform_indices = @transform_1, window_bounds = array<i64: 64, 128>}, {pipeline_mode = #tpu.pipeline_mode<synchronous>, transform_indices = @transform_2, window_bounds = array<i64: 1, 128>}, {pipeline_mode = #tpu.pipeline_mode<synchronous>, transform_indices = @transform_3, window_bounds = array<i64: 1, 128>}, {pipeline_mode = #tpu.pipeline_mode<synchronous>, transform_indices = @transform_4, window_bounds = array<i64: 128, 256>}, {pipeline_mode = #tpu.pipeline_mode<synchronous>, transform_indices = @transform_5, window_bounds = array<i64: 1, 256>}, {pipeline_mode = #tpu.pipeline_mode<synchronous>, transform_indices = @transform_6, window_bounds = array<i64: 1, 256>}, {pipeline_mode = #tpu.pipeline_mode<synchronous>, transform_indices = @transform_7, window_bounds = array<i64: 256, 384>}, {pipeline_mode = #tpu.pipeline_mode<synchronous>, transform_indices = @transform_8, window_bounds = array<i64: 1, 256>}, {pipeline_mode = #tpu.pipeline_mode<synchronous>, transform_indices = @transform_9, window_bounds = array<i64: 1, 256>}, {pipeline_mode = #tpu.pipeline_mode<synchronous>, transform_indices = @transform_10, window_bounds = array<i64: 256, 256>}, {pipeline_mode = #tpu.pipeline_mode<synchronous>, transform_indices = @transform_11, window_bounds = array<i64: 1, 256>}, {pipeline_mode = #tpu.pipeline_mode<synchronous>, transform_indices = @transform_12, window_bounds = array<i64: 1, 256>}, {pipeline_mode = #tpu.pipeline_mode<synchronous>, transform_indices = @transform_13, window_bounds = array<i64: 256, 384>}, {transform_indices = @transform_14, window_bounds = array<i64: 32, 384>}]} {
    %0 = tpu.iota {dimensions = array<i32: 0>} : vector<32x1xi32>
    %c16_i32 = arith.constant 16 : i32
    %c0_i32 = arith.constant 0 : i32
    %1 = arith.cmpi eq, %c16_i32, %c0_i32 : i32
    %c1_i32 = arith.constant 1 : i32
    %2 = arith.select %1, %c1_i32, %c16_i32 : i32
    %3 = vector.broadcast %2 : i32 to vector<32x1xi32>
    %4 = arith.remsi %0, %3 : vector<32x1xi32>
    %c0_i32_0 = arith.constant 0 : i32
    %5 = vector.broadcast %c0_i32_0 : i32 to vector<32x1xi32>
    %6 = arith.cmpi ne, %4, %5 : vector<32x1xi32>
    %c0_i32_1 = arith.constant 0 : i32
    %7 = vector.broadcast %c0_i32_1 : i32 to vector<32x1xi32>
    %8 = arith.cmpi slt, %4, %7 : vector<32x1xi32>
    %c0_i32_2 = arith.constant 0 : i32
    %9 = arith.cmpi slt, %2, %c0_i32_2 : i32
    %10 = vector.broadcast %9 : i1 to vector<32x1xi1>
    %11 = vector.broadcast %10 : vector<32x1xi1> to vector<32x1xi1>
    %12 = arith.xori %8, %11 : vector<32x1xi1>
    %13 = arith.andi %12, %6 : vector<32x1xi1>
    %14 = vector.broadcast %2 : i32 to vector<32x1xi32>
    %15 = arith.addi %4, %14 : vector<32x1xi32>
    %16 = arith.select %13, %15, %4 : vector<32x1xi1>, vector<32x1xi32>
    %c0_i32_3 = arith.constant 0 : i32
    %17 = vector.broadcast %c0_i32_3 : i32 to vector<32x1xi32>
    %18 = arith.cmpi ne, %16, %17 : vector<32x1xi32>
    %19 = arith.extui %18 : vector<32x1xi1> to vector<32x1xi32>
    %20 = arith.sitofp %19 : vector<32x1xi32> to vector<32x1xf32>
    %c15_i32 = arith.constant 15 : i32
    %21 = vector.broadcast %c15_i32 : i32 to vector<32x1xi32>
    %22 = arith.cmpi ne, %16, %21 : vector<32x1xi32>
    %23 = arith.extui %22 : vector<32x1xi1> to vector<32x1xi32>
    %24 = arith.sitofp %23 : vector<32x1xi32> to vector<32x1xf32>
    %c0 = arith.constant 0 : index
    %c0_4 = arith.constant 0 : index
    %25 = vector.load %arg1[%c0, %c0_4] : memref<32x64xf32, #tpu.memory_space<vmem>>, vector<32x64xf32>
    %26 = arith.truncf %25 : vector<32x64xf32> to vector<32x64xbf16>
    %c0_5 = arith.constant 0 : index
    %c0_6 = arith.constant 0 : index
    %27 = vector.load %arg2[%c0_5, %c0_6] : memref<64x128xbf16, #tpu.memory_space<vmem>>, vector<64x128xbf16>
    %cst = arith.constant dense<0.000000e+00> : vector<32x128xf32>
    %28 = tpu.matmul %26, %27, %cst {dimension_numbers = #tpu.dot_dimension_numbers<[1], [0], [0], [1], [0, 0, 1, 1], [], []>} : vector<32x64xbf16>, vector<64x128xbf16>, vector<32x128xf32> -> vector<32x128xf32>
    %c0_7 = arith.constant 0 : index
    %c256 = arith.constant 256 : index
    %29 = vector.load %arg15[%c0_7, %c256] : memref<32x384xf32, #tpu.memory_space<vmem>>, vector<32x128xf32>
    tpu.vector_store %arg15[%c0_7, %c256], %28 {strides = array<i32>} : memref<32x384xf32, #tpu.memory_space<vmem>>, vector<32x128xf32>,
    %c0_8 = arith.constant 0 : index
    %c256_9 = arith.constant 256 : index
    %30 = vector.load %arg15[%c0_8, %c256_9] : memref<32x384xf32, #tpu.memory_space<vmem>>, vector<32x128xf32>
    %c0_10 = arith.constant 0 : index
    %c0_11 = arith.constant 0 : index
    %31 = vector.load %arg3[%c0_10, %c0_11] : memref<1x128xf32, #tpu.memory_space<vmem>>, vector<1x128xf32>
    %32 = vector.broadcast %31 : vector<1x128xf32> to vector<32x128xf32>
    %33 = arith.mulf %30, %32 : vector<32x128xf32>
    %c0_12 = arith.constant 0 : index
    %c0_13 = arith.constant 0 : index
    %34 = vector.load %arg4[%c0_12, %c0_13] : memref<1x128xf32, #tpu.memory_space<vmem>>, vector<1x128xf32>
    %35 = vector.broadcast %34 : vector<1x128xf32> to vector<32x128xf32>
    %36 = arith.addf %33, %35 : vector<32x128xf32>
    %cst_14 = arith.constant 0.000000e+00 : f32
    %37 = vector.broadcast %cst_14 : f32 to vector<32x128xf32>
    %38 = arith.maximumf %36, %37 : vector<32x128xf32>
    %39 = arith.truncf %38 : vector<32x128xf32> to vector<32x128xbf16>
    %c0_15 = arith.constant 0 : index
    %c0_16 = arith.constant 0 : index
    %40 = vector.load %arg5[%c0_15, %c0_16] : memref<128x256xbf16, #tpu.memory_space<vmem>>, vector<128x256xbf16>
    %cst_17 = arith.constant dense<0.000000e+00> : vector<32x256xf32>
    %41 = tpu.matmul %39, %40, %cst_17 {dimension_numbers = #tpu.dot_dimension_numbers<[1], [0], [0], [1], [0, 0, 1, 1], [], []>} : vector<32x128xbf16>, vector<128x256xbf16>, vector<32x256xf32> -> vector<32x256xf32>
    %c0_18 = arith.constant 0 : index
    %c0_19 = arith.constant 0 : index
    %42 = vector.load %arg6[%c0_18, %c0_19] : memref<1x256xf32, #tpu.memory_space<vmem>>, vector<1x256xf32>
    %43 = vector.broadcast %42 : vector<1x256xf32> to vector<32x256xf32>
    %44 = arith.mulf %41, %43 : vector<32x256xf32>
    %c0_20 = arith.constant 0 : index
    %c0_21 = arith.constant 0 : index
    %45 = vector.load %arg7[%c0_20, %c0_21] : memref<1x256xf32, #tpu.memory_space<vmem>>, vector<1x256xf32>
    %46 = vector.broadcast %45 : vector<1x256xf32> to vector<32x256xf32>
    %47 = arith.addf %44, %46 : vector<32x256xf32>
    %cst_22 = arith.constant 0.000000e+00 : f32
    %48 = vector.broadcast %cst_22 : f32 to vector<32x256xf32>
    %49 = arith.maximumf %47, %48 : vector<32x256xf32>
    %50 = arith.truncf %49 : vector<32x256xf32> to vector<32x256xbf16>
    %c0_23 = arith.constant 0 : index
    %c0_24 = arith.constant 0 : index
    %51 = vector.load %arg8[%c0_23, %c0_24] : memref<256x384xbf16, #tpu.memory_space<vmem>>, vector<256x384xbf16>
    %cst_25 = arith.constant dense<0.000000e+00> : vector<32x384xf32>
    %52 = tpu.matmul %50, %51, %cst_25 {dimension_numbers = #tpu.dot_dimension_numbers<[1], [0], [0], [1], [0, 0, 1, 1], [], []>} : vector<32x256xbf16>, vector<256x384xbf16>, vector<32x384xf32> -> vector<32x384xf32>
    %53 = vector.extract_strided_slice %52 {offsets = [0, 0], sizes = [32, 128], strides = [1, 1]} : vector<32x384xf32> to vector<32x128xf32>
    %54 = vector.extract_strided_slice %52 {offsets = [0, 128], sizes = [32, 128], strides = [1, 1]} : vector<32x384xf32> to vector<32x128xf32>
    %55 = vector.extract_strided_slice %52 {offsets = [0, 256], sizes = [32, 128], strides = [1, 1]} : vector<32x384xf32> to vector<32x128xf32>
    %c1_i32_26 = arith.constant 1 : i32
    %56 = tpu.dynamic_rotate %53 by %c1_i32_26 dim 0 : vector<32x128xf32>, i32 -> vector<32x128xf32>
    %57 = vector.broadcast %20 : vector<32x1xf32> to vector<32x128xf32>
    %58 = arith.mulf %57, %56 : vector<32x128xf32>
    %59 = arith.addf %54, %58 : vector<32x128xf32>
    %c31_i32 = arith.constant 31 : i32
    %60 = tpu.dynamic_rotate %55 by %c31_i32 dim 0 : vector<32x128xf32>, i32 -> vector<32x128xf32>
    %61 = vector.broadcast %24 : vector<32x1xf32> to vector<32x128xf32>
    %62 = arith.mulf %61, %60 : vector<32x128xf32>
    %63 = arith.addf %59, %62 : vector<32x128xf32>
    %c0_27 = arith.constant 0 : index
    %c128 = arith.constant 128 : index
    %64 = vector.load %arg15[%c0_27, %c128] : memref<32x384xf32, #tpu.memory_space<vmem>>, vector<32x128xf32>
    tpu.vector_store %arg15[%c0_27, %c128], %63 {strides = array<i32>} : memref<32x384xf32, #tpu.memory_space<vmem>>, vector<32x128xf32>,
    %c0_28 = arith.constant 0 : index
    %c128_29 = arith.constant 128 : index
    %65 = vector.load %arg15[%c0_28, %c128_29] : memref<32x384xf32, #tpu.memory_space<vmem>>, vector<32x256xf32>
    %c0_30 = arith.constant 0 : index
    %c0_31 = arith.constant 0 : index
    %66 = vector.load %arg9[%c0_30, %c0_31] : memref<1x256xf32, #tpu.memory_space<vmem>>, vector<1x256xf32>
    %67 = vector.broadcast %66 : vector<1x256xf32> to vector<32x256xf32>
    %68 = arith.mulf %65, %67 : vector<32x256xf32>
    %c0_32 = arith.constant 0 : index
    %c0_33 = arith.constant 0 : index
    %69 = vector.load %arg10[%c0_32, %c0_33] : memref<1x256xf32, #tpu.memory_space<vmem>>, vector<1x256xf32>
    %70 = vector.broadcast %69 : vector<1x256xf32> to vector<32x256xf32>
    %71 = arith.addf %68, %70 : vector<32x256xf32>
    %cst_34 = arith.constant 0.000000e+00 : f32
    %72 = vector.broadcast %cst_34 : f32 to vector<32x256xf32>
    %73 = arith.maximumf %71, %72 : vector<32x256xf32>
    %74 = arith.truncf %73 : vector<32x256xf32> to vector<32x256xbf16>
    %c0_35 = arith.constant 0 : index
    %c0_36 = arith.constant 0 : index
    %75 = vector.load %arg11[%c0_35, %c0_36] : memref<256x256xbf16, #tpu.memory_space<vmem>>, vector<256x256xbf16>
    %cst_37 = arith.constant dense<0.000000e+00> : vector<32x256xf32>
    %76 = tpu.matmul %74, %75, %cst_37 {dimension_numbers = #tpu.dot_dimension_numbers<[1], [0], [0], [1], [0, 0, 1, 1], [], []>} : vector<32x256xbf16>, vector<256x256xbf16>, vector<32x256xf32> -> vector<32x256xf32>
    %c0_38 = arith.constant 0 : index
    %c0_39 = arith.constant 0 : index
    %77 = vector.load %arg12[%c0_38, %c0_39] : memref<1x256xf32, #tpu.memory_space<vmem>>, vector<1x256xf32>
    %78 = vector.broadcast %77 : vector<1x256xf32> to vector<32x256xf32>
    %79 = arith.mulf %76, %78 : vector<32x256xf32>
    %c0_40 = arith.constant 0 : index
    %c0_41 = arith.constant 0 : index
    %80 = vector.load %arg13[%c0_40, %c0_41] : memref<1x256xf32, #tpu.memory_space<vmem>>, vector<1x256xf32>
    %81 = vector.broadcast %80 : vector<1x256xf32> to vector<32x256xf32>
    %82 = arith.addf %79, %81 : vector<32x256xf32>
    %cst_42 = arith.constant 0.000000e+00 : f32
    %83 = vector.broadcast %cst_42 : f32 to vector<32x256xf32>
    %84 = arith.maximumf %82, %83 : vector<32x256xf32>
    %85 = arith.truncf %84 : vector<32x256xf32> to vector<32x256xbf16>
    %c0_43 = arith.constant 0 : index
    %c0_44 = arith.constant 0 : index
    %86 = vector.load %arg14[%c0_43, %c0_44] : memref<256x384xbf16, #tpu.memory_space<vmem>>, vector<256x384xbf16>
    %cst_45 = arith.constant dense<0.000000e+00> : vector<32x384xf32>
    %87 = tpu.matmul %85, %86, %cst_45 {dimension_numbers = #tpu.dot_dimension_numbers<[1], [0], [0], [1], [0, 0, 1, 1], [], []>} : vector<32x256xbf16>, vector<256x384xbf16>, vector<32x384xf32> -> vector<32x384xf32>
    %88 = vector.extract_strided_slice %87 {offsets = [0, 0], sizes = [32, 128], strides = [1, 1]} : vector<32x384xf32> to vector<32x128xf32>
    %89 = vector.extract_strided_slice %87 {offsets = [0, 128], sizes = [32, 128], strides = [1, 1]} : vector<32x384xf32> to vector<32x128xf32>
    %90 = vector.extract_strided_slice %87 {offsets = [0, 256], sizes = [32, 128], strides = [1, 1]} : vector<32x384xf32> to vector<32x128xf32>
    %c1_i32_46 = arith.constant 1 : i32
    %91 = tpu.dynamic_rotate %88 by %c1_i32_46 dim 0 : vector<32x128xf32>, i32 -> vector<32x128xf32>
    %92 = vector.broadcast %20 : vector<32x1xf32> to vector<32x128xf32>
    %93 = arith.mulf %92, %91 : vector<32x128xf32>
    %94 = arith.addf %89, %93 : vector<32x128xf32>
    %c31_i32_47 = arith.constant 31 : i32
    %95 = tpu.dynamic_rotate %90 by %c31_i32_47 dim 0 : vector<32x128xf32>, i32 -> vector<32x128xf32>
    %96 = vector.broadcast %24 : vector<32x1xf32> to vector<32x128xf32>
    %97 = arith.mulf %96, %95 : vector<32x128xf32>
    %98 = arith.addf %94, %97 : vector<32x128xf32>
    %c0_48 = arith.constant 0 : index
    %c0_49 = arith.constant 0 : index
    %99 = vector.load %arg15[%c0_48, %c0_49] : memref<32x384xf32, #tpu.memory_space<vmem>>, vector<32x128xf32>
    tpu.vector_store %arg15[%c0_48, %c0_49], %98 {strides = array<i32>} : memref<32x384xf32, #tpu.memory_space<vmem>>, vector<32x128xf32>,
    return
  }
  func.func @transform_0(%arg0: i32) -> (i32, i32) {
    %c0_i32 = arith.constant 0 : i32
    %c0_i32_0 = arith.constant 0 : i32
    return %arg0, %c0_i32 : i32, i32
  }
  func.func @transform_1(%arg0: i32) -> (i32, i32) {
    %c0_i32 = arith.constant 0 : i32
    %c0_i32_0 = arith.constant 0 : i32
    %c0_i32_1 = arith.constant 0 : i32
    return %c0_i32, %c0_i32_0 : i32, i32
  }
  func.func @transform_2(%arg0: i32) -> (i32, i32) {
    %c0_i32 = arith.constant 0 : i32
    %c0_i32_0 = arith.constant 0 : i32
    %c0_i32_1 = arith.constant 0 : i32
    return %c0_i32, %c0_i32_0 : i32, i32
  }
  func.func @transform_3(%arg0: i32) -> (i32, i32) {
    %c0_i32 = arith.constant 0 : i32
    %c0_i32_0 = arith.constant 0 : i32
    %c0_i32_1 = arith.constant 0 : i32
    return %c0_i32, %c0_i32_0 : i32, i32
  }
  func.func @transform_4(%arg0: i32) -> (i32, i32) {
    %c0_i32 = arith.constant 0 : i32
    %c0_i32_0 = arith.constant 0 : i32
    %c0_i32_1 = arith.constant 0 : i32
    return %c0_i32, %c0_i32_0 : i32, i32
  }
  func.func @transform_5(%arg0: i32) -> (i32, i32) {
    %c0_i32 = arith.constant 0 : i32
    %c0_i32_0 = arith.constant 0 : i32
    %c0_i32_1 = arith.constant 0 : i32
    return %c0_i32, %c0_i32_0 : i32, i32
  }
  func.func @transform_6(%arg0: i32) -> (i32, i32) {
    %c0_i32 = arith.constant 0 : i32
    %c0_i32_0 = arith.constant 0 : i32
    %c0_i32_1 = arith.constant 0 : i32
    return %c0_i32, %c0_i32_0 : i32, i32
  }
  func.func @transform_7(%arg0: i32) -> (i32, i32) {
    %c0_i32 = arith.constant 0 : i32
    %c0_i32_0 = arith.constant 0 : i32
    %c0_i32_1 = arith.constant 0 : i32
    return %c0_i32, %c0_i32_0 : i32, i32
  }
  func.func @transform_8(%arg0: i32) -> (i32, i32) {
    %c0_i32 = arith.constant 0 : i32
    %c0_i32_0 = arith.constant 0 : i32
    %c0_i32_1 = arith.constant 0 : i32
    return %c0_i32, %c0_i32_0 : i32, i32
  }
  func.func @transform_9(%arg0: i32) -> (i32, i32) {
    %c0_i32 = arith.constant 0 : i32
    %c0_i32_0 = arith.constant 0 : i32
    %c0_i32_1 = arith.constant 0 : i32
    return %c0_i32, %c0_i32_0 : i32, i32
  }
  func.func @transform_10(%arg0: i32) -> (i32, i32) {
    %c0_i32 = arith.constant 0 : i32
    %c0_i32_0 = arith.constant 0 : i32
    %c0_i32_1 = arith.constant 0 : i32
    return %c0_i32, %c0_i32_0 : i32, i32
  }
  func.func @transform_11(%arg0: i32) -> (i32, i32) {
    %c0_i32 = arith.constant 0 : i32
    %c0_i32_0 = arith.constant 0 : i32
    %c0_i32_1 = arith.constant 0 : i32
    return %c0_i32, %c0_i32_0 : i32, i32
  }
  func.func @transform_12(%arg0: i32) -> (i32, i32) {
    %c0_i32 = arith.constant 0 : i32
    %c0_i32_0 = arith.constant 0 : i32
    %c0_i32_1 = arith.constant 0 : i32
    return %c0_i32, %c0_i32_0 : i32, i32
  }
  func.func @transform_13(%arg0: i32) -> (i32, i32) {
    %c0_i32 = arith.constant 0 : i32
    %c0_i32_0 = arith.constant 0 : i32
    %c0_i32_1 = arith.constant 0 : i32
    return %c0_i32, %c0_i32_0 : i32, i32
  }
  func.func @transform_14(%arg0: i32) -> (i32, i32) {
    %c0_i32 = arith.constant 0 : i32
    %c0_i32_0 = arith.constant 0 : i32
    return %arg0, %c0_i32 : i32, i32
  }
}

</mosaic_0001>

<bundles_post_ra>
// kernel: _lambda_.1
= control target key start
LH: loop header
LB: loop body
LE: loop exit
PB: predicated region body
PF: predicated region fallthrough
CT: control target
= control target key end

     0   :  { %19 = vsyncpa [#allocation3], 0  ;;  %s3248_s0 = inlined_call_operand.vmem [shape: f32[32,64], index: 0, kind: input, shape index: {}]   ;;  %s3249_s1 = inlined_call_operand.vmem [shape: bf16[64,128], index: 1, kind: input, shape index: {}]   ;;  %s3250_s2 = inlined_call_operand.vmem [shape: f32[1,128], index: 2, kind: input, shape index: {}]   ;;  %s3251_s3 = inlined_call_operand.vmem [shape: f32[1,128], index: 3, kind: input, shape index: {}]   ;;  %s3252_s4 = inlined_call_operand.hbm [shape: bf16[128,256], index: 4, kind: input, shape index: {}]   ;;  %s3253_s5 = inlined_call_operand.vmem [shape: f32[1,256], index: 5, kind: input, shape index: {}, may-alias: {5,8,11}]   ;;  %s3254_s6 = inlined_call_operand.vmem [shape: f32[1,256], index: 6, kind: input, shape index: {}, may-alias: {6,9,12}]   ;;  %s3255_s7 = inlined_call_operand.hbm [shape: bf16[256,384], index: 7, kind: input, shape index: {}]   ;;  %s3256_s8 = inlined_call_operand.vmem [shape: f32[1,256], index: 8, kind: input, shape index: {}, may-alias: {5,8,11}]   ;;  %s3257_s9 = inlined_call_operand.vmem [shape: f32[1,256], index: 9, kind: input, shape index: {}, may-alias: {6,9,12}]   ;;  %s3258_s10 = inlined_call_operand.hbm [shape: bf16[256,256], index: 10, kind: input, shape index: {}]   ;;  %s3259_s11 = inlined_call_operand.vmem [shape: f32[1,256], index: 11, kind: input, shape index: {}, may-alias: {5,8,11}]   ;;  %s3260_s12 = inlined_call_operand.vmem [shape: f32[1,256], index: 12, kind: input, shape index: {}, may-alias: {6,9,12}]   ;;  %s3261_s13 = inlined_call_operand.vmem [shape: bf16[256,384], index: 13, kind: input, shape index: {}]   ;;  %s3262_s14 = inlined_call_operand.vmem [shape: f32[32,384], index: 14, kind: output, shape index: {}]  }
   0x1   :  { %20 = vsyncpa [#allocation5], 0  ;;  %s50_s15 = sshll.u32 %s3255_s7, 4  ;;  %s2584_s16 = smov [#allocation4]   ;;  %s51_s15 = int_to_ptr.hbm [resolvable:$true] %s50_s15 }
   0x2   :  { %s52_s17 = sshll.u32 %s2584_s16, 4  ;;  %s33_s20 = sshll.u32 %s3252_s4, 4  ;;  %s53_s17 = int_to_ptr.vmem [resolvable:$true] %s52_s17  ;;  %s34_s20 = int_to_ptr.hbm [resolvable:$true] %s33_s20 }
   0x3   :  { %s2585_s21 = smov 192   ;;  %s2586_s22 = smov 12  }
   0x4   :  { %58 = dma.hbm_to_vmem [thread:$0]  %s51_s15, 6144, %s53_s17, [#allocation5], %s2585_s21, %s2585_s21, %s2586_s22  }
   0x5   :  { %s2587_s23 = smov [#allocation2]   ;;  %s2588_s25 = smov 128  }
   0x6   :  { %s35_s24 = sshll.u32 %s2587_s23, 4  ;;  %s2589_s26 = smov 8   ;;  %s36_s24 = int_to_ptr.vmem [resolvable:$true] %s35_s24 }
   0x7   :  { %41 = dma.hbm_to_vmem [thread:$0]  %s34_s20, 2048, %s36_s24, [#allocation3], %s2588_s25, %s2588_s25, %s2589_s26  }
   0x8   :  { %s67_s28 = sshll.u32 %s3258_s10, 4  ;;  %s2590_s29 = smov [#allocation6]   ;;  %s68_s28 = int_to_ptr.hbm [resolvable:$true] %s67_s28 }
   0x9   :  { %s69_s30 = sshll.u32 %s2590_s29, 4  ;;  %s70_s30 = int_to_ptr.vmem [resolvable:$true] %s69_s30 }
   0xa   :  { %75 = dma.hbm_to_vmem [thread:$0]  %s68_s28, 4096, %s70_s30, [#allocation5], %s2588_s25, %s2588_s25, %s2589_s26  }
   0xb   :  { %2580 = dma.done.wait [#allocation3], 2048  }
   0xc   :  { %2581 = vsyncadd [#allocation3], 4294965248 }
   0xd   :  { %2582 = dma.done.wait [#allocation5], 10240  }
   0xe   :  { %2583 = vsyncadd [#allocation5], 4294957056  ;;  %v2345_v0 = vld [vmem:[%s3249_s1 + $0x18] sm:$0xff]  ;;  %v2344_v1 = vld [vmem:[%s3249_s1 + $0x10] sm:$0xff]  ;;  %vm210_vm0 = vcmask 523264  }
   0xf   :  { %221 = vmatpush.bf16.msra.mxu0 %v2345_v0  ;;  %v1824_v2 = vld [vmem:[#allocation2 + $0x70] sm:$0xf]  ;;  %v2361_v3 = vld [vmem:[#allocation2 + $0x74] sm:$0xf0]  ;;  %v2360_v4 = vld [vmem:[#allocation2 + $0x74] sm:$0xf] }
  0x10   :  { %v1826_v5 = vld [vmem:[#allocation2 + $0x78] sm:$0xf0]  ;;  %v1825_v6 = vor.u32 %v2361_v3, %v1824_v2  ;;  %v1816_v8 = vld [vmem:[#allocation2 + $0x60] sm:$0xf]  ;;  %v2359_v9 = vld [vmem:[#allocation2 + $0x64] sm:$0xf0] }
  0x11   :  { %v1829_v7 = vor.u32 %v2360_v4, %v1826_v5  ;;  %v2358_v10 = vld [vmem:[#allocation2 + $0x64] sm:$0xf]  ;;  %v1818_v11 = vld [vmem:[#allocation2 + $0x68] sm:$0xf0]  ;;  %v1817_v13 = vor.u32 %v2359_v9, %v1816_v8  ;;  %v174_v19 = vld [vmem:[%s3248_s0 + $0x10] sm:$0xff] }
  0x12   :  { %v2343_v12 = vld [vmem:[%s3249_s1 + $0x8] sm:$0xff]  ;;  %362 = vmatpush.bf16.msra.mxu1 %v1825_v6  ;;  %v1821_v14 = vor.u32 %v2358_v10, %v1818_v11  ;;  %v2342_v15 = vld [vmem:[%s3249_s1] sm:$0xff]  ;;  %v175_v20 = vld [vmem:[%s3248_s0 + $0x18] sm:$0xff] }
  0x13   :  { %222 = vmatpush.bf16.msra.mxu0 %v2344_v1  ;;  %381 = vmatpush.bf16.msra.mxu2 %v1829_v7  ;;  %v172_v16 = vld [vmem:[%s3248_s0] sm:$0xff]  ;;  %v173_v17 = vld [vmem:[%s3248_s0 + $0x8] sm:$0xff]  ;;  %v177_v21 = vpack.c.bf16 %v175_v20, %v174_v19  ;;  %v1808_v22 = vld [vmem:[#allocation2 + $0x50] sm:$0xf] }
  0x14   :  { %v176_v18 = vpack.c.bf16 %v173_v17, %v172_v16  ;;  %v2357_v23 = vld [vmem:[#allocation2 + $0x54] sm:$0xf0]  ;;  %v2356_v24 = vld [vmem:[#allocation2 + $0x54] sm:$0xf]  ;;  %v1810_v26 = vld [vmem:[#allocation2 + $0x58] sm:$0xf0] }
  0x15   :  { %v1809_v25 = vor.u32 %v2357_v23, %v1808_v22  ;;  %v1813_v27 = vor.u32 %v2356_v24, %v1810_v26  ;;  %v1800_v28 = vld [vmem:[#allocation2 + $0x40] sm:$0xf]  ;;  %v2355_v29 = vld [vmem:[#allocation2 + $0x44] sm:$0xf0]  ;;  %v2354_v30 = vld [vmem:[#allocation2 + $0x44] sm:$0xf] }
  0x16   :  { %363 = vmatpush.bf16.msra.mxu1 %v1817_v13  ;;  %v1801_v31 = vor.u32 %v2355_v29, %v1800_v28  ;;  %v1802_v32 = vld [vmem:[#allocation2 + $0x48] sm:$0xf0]  ;;  %v1792_v34 = vld [vmem:[#allocation2 + $0x30] sm:$0xf]  ;;  %v2353_v35 = vld [vmem:[#allocation2 + $0x34] sm:$0xf0] }
  0x17   :  { %223 = vmatpush.bf16.msra.mxu0 %v2343_v12  ;;  %382 = vmatpush.bf16.msra.mxu2 %v1821_v14  ;;  %v1805_v33 = vor.u32 %v2354_v30, %v1802_v32  ;;  %v2352_v36 = vld [vmem:[#allocation2 + $0x34] sm:$0xf]  ;;  %v1793_v37 = vor.u32 %v2353_v35, %v1792_v34  ;;  %v1794_v38 = vld [vmem:[#allocation2 + $0x38] sm:$0xf0]  ;;  %v1784_v40 = vld [vmem:[#allocation2 + $0x20] sm:$0xf] }
  0x18   :  { %v1797_v39 = vor.u32 %v2352_v36, %v1794_v38  ;;  %v2351_v41 = vld [vmem:[#allocation2 + $0x24] sm:$0xf0]  ;;  %v2350_v42 = vld [vmem:[#allocation2 + $0x24] sm:$0xf]  ;;  %v1786_v44 = vld [vmem:[#allocation2 + $0x28] sm:$0xf0] }
  0x19   :  { %v1785_v43 = vor.u32 %v2351_v41, %v1784_v40  ;;  %v1789_v45 = vor.u32 %v2350_v42, %v1786_v44  ;;  %v1776_v46 = vld [vmem:[#allocation2 + $0x10] sm:$0xf]  ;;  %v2349_v47 = vld [vmem:[#allocation2 + $0x14] sm:$0xf0]  ;;  %v2348_v48 = vld [vmem:[#allocation2 + $0x14] sm:$0xf] }
  0x1a   :  { %364 = vmatpush.bf16.msra.mxu1 %v1809_v25  ;;  %v1777_v49 = vor.u32 %v2349_v47, %v1776_v46  ;;  %v1778_v50 = vld [vmem:[#allocation2 + $0x18] sm:$0xf0]  ;;  %v1768_v52 = vld [vmem:[#allocation2] sm:$0xf]  ;;  %v2347_v53 = vld [vmem:[#allocation2 + $0x4] sm:$0xf0] }
  0x1b   :  { %224 = vmatpush.bf16.msra.mxu0 %v2342_v15  ;;  %383 = vmatpush.bf16.msra.mxu2 %v1813_v27  ;;  %v1781_v51 = vor.u32 %v2348_v48, %v1778_v50  ;;  %v2346_v54 = vld [vmem:[#allocation2 + $0x4] sm:$0xf]  ;;  %v1769_v55 = vor.u32 %v2347_v53, %v1768_v52  ;;  %v1770_v56 = vld [vmem:[#allocation2 + $0x8] sm:$0xf0]  ;;  %v2703_v58 = vld [vmem:[%s3256_s8] sm:$0x3] }
  0x1c   :  { %v1773_v57 = vor.u32 %v2346_v54, %v1770_v56  ;;  %v2708_v60 = vld [vmem:[%s3250_s2] ss:$0 sm:$0xff]  ;;  %v1916_v62 = vld [vmem:[#allocation4 + $0xa8] sm:$0xf]  ;;  %v2384_v63 = vld [vmem:[#allocation4 + $0xb0] sm:$0xf0] }
  0x1d   :  { %v2713_v61 = vld [vmem:[%s3257_s9] sm:$0x3]  ;;  %v2719_v0 = vperm.slane %v2703_v58, 1  ;;  %v1917_v2 = vor.u32 %v2384_v63, %v1916_v62  ;;  %v2383_v3 = vld [vmem:[#allocation4 + $0xac] sm:$0xf] }
  0x1e   :  { %1764 = vmatmul.msk.bf16.vlgmr.msra.gmra.mxu0 %vm210_vm0, %v176_v18  ;;  %365 = vmatpush.bf16.msra.mxu1 %v1801_v31  ;;  %v2724_v1 = vld [vmem:[%s3251_s3] ss:$0 sm:$0xff]  ;;  %v1918_v4 = vld [vmem:[#allocation4 + $0xb4] sm:$0xf0]  ;;  %v1904_v5 = vld [vmem:[#allocation4 + $0x90] sm:$0xf] }
  0x1f   :  { %384 = vmatpush.bf16.msra.mxu2 %v1805_v33  ;;  %v1921_v6 = vor.u32 %v2383_v3, %v1918_v4  ;;  %v2381_v7 = vld [vmem:[#allocation4 + $0x98] sm:$0xf0]  ;;  %v2380_v8 = vld [vmem:[#allocation4 + $0x94] sm:$0xf]  ;;  %v1906_v9 = vld [vmem:[#allocation4 + $0x9c] sm:$0xf0]  ;;  %760 = vmatpush.bf16.msra.mxu3 %v1917_v2 }
  0x20   :  { %v1905_v11 = vor.u32 %v2381_v7, %v1904_v5  ;;  %v2012_v12 = vld [vmem:[#allocation4 + $0x168] sm:$0xf]  ;;  %v2408_v13 = vld [vmem:[#allocation4 + $0x170] sm:$0xf0]  ;;  %v2407_v14 = vld [vmem:[#allocation4 + $0x16c] sm:$0xf]  ;;  %v1909_v15 = vor.u32 %v2380_v8, %v1906_v9 }
  0x21   :  { %v2013_v16 = vor.u32 %v2408_v13, %v2012_v12  ;;  %v2014_v17 = vld [vmem:[#allocation4 + $0x174] sm:$0xf0]  ;;  %v2728_v19 = vperm.slane %v2713_v61, 1  ;;  %v2377_v22 = vld [vmem:[#allocation4 + $0x7c] sm:$0xf] }
  0x22   :  { %366 = vmatpush.bf16.msra.mxu1 %v1793_v37  ;;  %v1892_v18 = vld [vmem:[#allocation4 + $0x78] sm:$0xf]  ;;  %v2017_v20 = vor.u32 %v2407_v14, %v2014_v17  ;;  %v1894_v23 = vld [vmem:[#allocation4 + $0x84] sm:$0xf0]  ;;  %v2000_v25 = vld [vmem:[#allocation4 + $0x150] sm:$0xf] }
  0x23   :  { %385 = vmatpush.bf16.msra.mxu2 %v1797_v39  ;;  %779 = vmatpush.bf16.msrb.mxu0 %v2013_v16  ;;  %v2405_v26 = vld [vmem:[#allocation4 + $0x158] sm:$0xf0]  ;;  %v2404_v27 = vld [vmem:[#allocation4 + $0x154] sm:$0xf]  ;;  %v2002_v32 = vld [vmem:[#allocation4 + $0x15c] sm:$0xf0]  ;;  %v1897_v34 = vor.u32 %v2377_v22, %v1894_v23 }
  0x24   :  { %761 = vmatpush.bf16.msra.mxu3 %v1905_v11  ;;  %v2001_v31 = vor.u32 %v2405_v26, %v2000_v25  ;;  %v2005_v35 = vor.u32 %v2404_v27, %v2002_v32  ;;  %v1880_v36 = vld [vmem:[#allocation4 + $0x60] sm:$0xf]  ;;  %v2375_v37 = vld [vmem:[#allocation4 + $0x68] sm:$0xf0]  ;;  %v1988_v38 = vld [vmem:[#allocation4 + $0x138] sm:$0xf] }
  0x25   :  { %v2402_v39 = vld [vmem:[#allocation4 + $0x140] sm:$0xf0]  ;;  %v1882_v44 = vld [vmem:[#allocation4 + $0x6c] sm:$0xf0]  ;;  %v1881_v46 = vor.u32 %v2375_v37, %v1880_v36  ;;  %v2401_v5 = vld [vmem:[#allocation4 + $0x13c] sm:$0xf] }
  0x26   :  { %367 = vmatpush.bf16.msra.mxu1 %v1785_v43  ;;  %v2374_v43 = vld [vmem:[#allocation4 + $0x64] sm:$0xf]  ;;  %v1868_v8 = vld [vmem:[#allocation4 + $0x48] sm:$0xf]  ;;  %v2372_v9 = vld [vmem:[#allocation4 + $0x50] sm:$0xf0] }
  0x27   :  { %386 = vmatpush.bf16.msra.mxu2 %v1789_v45  ;;  %780 = vmatpush.bf16.msrb.mxu0 %v2001_v31  ;;  %v1989_v45 = vor.u32 %v2402_v39, %v1988_v38  ;;  %v1885_v50 = vor.u32 %v2374_v43, %v1882_v44  ;;  %v2371_v11 = vld [vmem:[#allocation4 + $0x4c] sm:$0xf]  ;;  %v1870_v12 = vld [vmem:[#allocation4 + $0x54] sm:$0xf0]  ;;  %v1978_v16 = vld [vmem:[#allocation4 + $0x12c] sm:$0xf0] }
  0x28   :  { %v1873_v13 = vor.u32 %v2371_v11, %v1870_v12  ;;  %v2399_v14 = vld [vmem:[#allocation4 + $0x128] sm:$0xf0]  ;;  %v1858_v23 = vld [vmem:[#allocation4 + $0x3c] sm:$0xf0]  ;;  %v1964_v25 = vld [vmem:[#allocation4 + $0x108] sm:$0xf] }
  0x29   :  { %v2396_v26 = vld [vmem:[#allocation4 + $0x110] sm:$0xf0]  ;;  %v1844_v31 = vld [vmem:[#allocation4 + $0x18] sm:$0xf]  ;;  %v2366_v32 = vld [vmem:[#allocation4 + $0x20] sm:$0xf0] }
  0x2a   :  { %368 = vmatpush.bf16.msra.mxu1 %v1777_v49  ;;  %v1965_v27 = vor.u32 %v2396_v26, %v1964_v25  ;;  %v1952_v37 = vld [vmem:[#allocation4 + $0xf0] sm:$0xf]  ;;  %v2393_v38 = vld [vmem:[#allocation4 + $0xf8] sm:$0xf0]  ;;  %v2392_v39 = vld [vmem:[#allocation4 + $0xf4] sm:$0xf] }
  0x2b   :  { %387 = vmatpush.bf16.msra.mxu2 %v1781_v51  ;;  %781 = vmatpush.bf16.msrb.mxu0 %v1989_v45  ;;  %v1832_v43 = vld [vmem:[#allocation4] sm:$0xf]  ;;  %v2363_v44 = vld [vmem:[#allocation4 + $0x8] sm:$0xf0]  ;;  %v2362_v45 = vld [vmem:[#allocation4 + $0x4] sm:$0xf] }
  0x2c   :  { %v2020_v11 = vld [vmem:[#allocation4 + $0x170] sm:$0xf]  ;;  %v2409_v12 = vld [vmem:[#allocation4 + $0x178] sm:$0xf0]  ;;  %v1888_v25 = vld [vmem:[#allocation4 + $0x68] sm:$0xf] }
  0x2d   :  { %v2376_v26 = vld [vmem:[#allocation4 + $0x70] sm:$0xf0] }
  0x2e   :  { %1765 = vmatmul.msk.bf16.gmra.mxu0 %vm210_vm0, %v177_v21  ;;  %369 = vmatpush.bf16.msra.mxu1 %v1769_v55  ;;  %v2378_v21 = vld [vmem:[#allocation4 + $0x80] sm:$0xf0] }
  0x2f   :  { %388 = vmatpush.bf16.msra.mxu2 %v1773_v57  ;;  %v1893_v30 = vor.u32 %v2378_v21, %v1892_v18  ;;  %v1856_v18 = vld [vmem:[#allocation4 + $0x30] sm:$0xf]  ;;  %v2368_v21 = vld [vmem:[#allocation4 + $0x34] sm:$0xf] }
  0x31   :  { %762 = vmatpush.bf16.msra.mxu3 %v1893_v30 }
  0x32   :  { %798 = vmatpush.bf16.msrb.mxu1 %v1921_v6  ;;  %v1990_v6 = vld [vmem:[#allocation4 + $0x144] sm:$0xf0] }
  0x33   :  { %817 = vmatpush.bf16.msrb.mxu2 %v2017_v20  ;;  %v1993_v7 = vor.u32 %v2401_v5, %v1990_v6  ;;  %v2369_v20 = vld [vmem:[#allocation4 + $0x38] sm:$0xf0]  ;;  %v1930_v6 = vld [vmem:[#allocation4 + $0xcc] sm:$0xf0] }
  0x34   :  { %v1857_v22 = vor.u32 %v2369_v20, %v1856_v18  ;;  %v2008_v18 = vld [vmem:[#allocation4 + $0x158] sm:$0xf]  ;;  %v2406_v20 = vld [vmem:[#allocation4 + $0x160] sm:$0xf0] }
  0x35   :  { %763 = vmatpush.bf16.msra.mxu3 %v1881_v46  ;;  %v1833_v46 = vor.u32 %v2363_v44, %v1832_v43  ;;  %v414_v43 = vld [vmem:[%s3254_s6] sm:$0x3] }
  0x36   :  { %799 = vmatpush.bf16.msrb.mxu1 %v1909_v15 }
  0x37   :  { %818 = vmatpush.bf16.msrb.mxu2 %v2005_v35  ;;  %v1846_v35 = vld [vmem:[#allocation4 + $0x24] sm:$0xf0] }
  0x3a   :  { %800 = vmatpush.bf16.msrb.mxu1 %v1897_v34  ;;  %v2365_v34 = vld [vmem:[#allocation4 + $0x1c] sm:$0xf] }
  0x3b   :  { %819 = vmatpush.bf16.msrb.mxu2 %v1993_v7  ;;  %v1849_v36 = vor.u32 %v2365_v34, %v1846_v35  ;;  %v1876_v35 = vld [vmem:[#allocation4 + $0x50] sm:$0xf] }
  0x3e   :  { %801 = vmatpush.bf16.msrb.mxu1 %v1885_v50  ;;  %v2390_v50 = vld [vmem:[#allocation4 + $0xe0] sm:$0xf0] }
  0x42   :  { %802 = vmatpush.bf16.msrb.mxu1 %v1873_v13  ;;  %v2144_v13 = vld [vmem:[#allocation6 + $0xf0] sm:$0xf] }
  0x9b   :  { %v226_v59 = vpop.f32.mrf.mxu0 }
  0x9c   :  { %236 = vst [vmem:[%s3262_s14 + $0x10] sm:$0xff] %v226_v59  ;;  %v248_v10 = vmul.f32 %v2708_v60, %v226_v59  ;;  %v927_v24 = vmul.f32 %v2719_v0, %v226_v59 }
  0x9e   :  { %v256_v29 = vadd.f32 %v2724_v1, %v248_v10  ;;  %v941_v41 = vadd.f32 %v2728_v19, %v927_v24  ;;  %v1869_v10 = vor.u32 %v2372_v9, %v1868_v8  ;;  %v1861_v24 = vor.u32 %v2368_v21, %v1858_v23  ;;  %v1912_v8 = vld [vmem:[#allocation4 + $0x98] sm:$0xf]  ;;  %v2382_v9 = vld [vmem:[#allocation4 + $0xa0] sm:$0xf0]  ;;  %v2136_v21 = vld [vmem:[#allocation6 + $0xe0] sm:$0xf] }
  0x9f   :  { %v2439_v23 = vld [vmem:[#allocation6 + $0xe4] sm:$0xf0] }
  0xa0   :  { %v260_v48 = vmax.f32 %v256_v29, 0.0  ;;  %v949_v51 = vmax.f32 %v941_v41, 0.0  ;;  %764 = vmatpush.bf16.msra.mxu3 %v1869_v10  ;;  %v1966_v29 = vld [vmem:[#allocation4 + $0x114] sm:$0xf0]  ;;  %803 = vmatpush.bf16.msrb.mxu1 %v1861_v24  ;;  %v1954_v41 = vld [vmem:[#allocation4 + $0xfc] sm:$0xf0]  ;;  %v1913_v10 = vor.u32 %v2382_v9, %v1912_v8  ;;  %v2137_v24 = vor.u32 %v2439_v23, %v2136_v21 }
  0xa1   :  { %v2394_v9 = vld [vmem:[#allocation4 + $0x100] sm:$0xf0]  ;;  %v417_v21 = vperm.slane %v414_v43, 1  ;;  %v2096_v23 = vld [vmem:[#allocation6 + $0x90] sm:$0xf] }
  0xa3   :  { %v228_v28 = vpop.f32.mrf.mxu0 }
  0xa4   :  { %237 = vst [vmem:[%s3262_s14 + $0x28] sm:$0xff] %v228_v28  ;;  %v249_v33 = vmul.f32 %v2708_v60, %v228_v28  ;;  %v929_v40 = vmul.f32 %v2719_v0, %v228_v28  ;;  %765 = vmatpush.bf16.msra.mxu3 %v1857_v22  ;;  %v2395_v28 = vld [vmem:[#allocation4 + $0x10c] sm:$0xf]  ;;  %804 = vmatpush.bf16.msrb.mxu1 %v1849_v36  ;;  %v2373_v36 = vld [vmem:[#allocation4 + $0x58] sm:$0xf0] }
  0xa5   :  { %v1969_v30 = vor.u32 %v2395_v28, %v1966_v29  ;;  %v2009_v22 = vor.u32 %v2406_v20, %v2008_v18  ;;  %v1889_v28 = vor.u32 %v2376_v26, %v1888_v25  ;;  %v1996_v29 = vld [vmem:[#allocation4 + $0x140] sm:$0xf]  ;;  %v2391_v18 = vld [vmem:[#allocation4 + $0xe8] sm:$0xf0] }
  0xa6   :  { %v257_v42 = vadd.f32 %v2724_v1, %v249_v33  ;;  %v943_v47 = vadd.f32 %v2728_v19, %v929_v40  ;;  %v1845_v33 = vor.u32 %v2366_v32, %v1844_v31  ;;  %v1953_v40 = vor.u32 %v2393_v38, %v1952_v37  ;;  %v2128_v31 = vld [vmem:[#allocation6 + $0xd0] sm:$0xf] }
  0xa8   :  { %v261_v49 = vmax.f32 %v257_v42, 0.0  ;;  %v951_v52 = vmax.f32 %v943_v47, 0.0  ;;  %766 = vmatpush.bf16.msra.mxu3 %v1845_v33  ;;  %v1957_v42 = vor.u32 %v2392_v39, %v1954_v41  ;;  %v1834_v47 = vld [vmem:[#allocation4 + $0xc] sm:$0xf0]  ;;  %v2437_v33 = vld [vmem:[#allocation6 + $0xd4] sm:$0xf0]  ;;  %v1877_v39 = vor.u32 %v2373_v36, %v1876_v35 }
  0xa9   :  { %v2129_v34 = vor.u32 %v2437_v33, %v2128_v31  ;;  %v2400_v41 = vld [vmem:[#allocation4 + $0x130] sm:$0xf0]  ;;  %v1936_v35 = vld [vmem:[#allocation4 + $0xc8] sm:$0xf] }
  0xaa   :  { %v264_v53 = vpack.c.bf16 %v261_v49, %v260_v48  ;;  %v2742_v55 = vpack.c.bf16 %v951_v52, %v949_v51  ;;  %v1837_v48 = vor.u32 %v2362_v45, %v1834_v47  ;;  %v1940_v49 = vld [vmem:[#allocation4 + $0xd8] sm:$0xf]  ;;  %v2389_v51 = vld [vmem:[#allocation4 + $0xdc] sm:$0xf]  ;;  %v2435_v45 = vld [vmem:[#allocation6 + $0xc4] sm:$0xf0] }
  0xab   :  { %v2740_v54 = vpop.f32.mrf.mxu0  ;;  %v1941_v52 = vor.u32 %v2390_v50, %v1940_v49  ;;  %v1864_v47 = vld [vmem:[#allocation4 + $0x38] sm:$0xf]  ;;  %v2388_v36 = vld [vmem:[#allocation4 + $0xd0] sm:$0xf0] }
  0xac   :  { %238 = vst [vmem:[%s3262_s14 + $0x40] sm:$0xff] %v2740_v54  ;;  %370 = vmatmul.bf16.vlgmr.msra.gmra.mxu1 %v264_v53  ;;  %389 = vmatmul.bf16.vlgmr.msra.gmra.mxu2 %v264_v53  ;;  %v250_v56 = vmul.f32 %v2708_v60, %v2740_v54  ;;  %v1942_v53 = vld [vmem:[#allocation4 + $0xe4] sm:$0xf0] }
  0xad   :  { %767 = vmatpush.bf16.msra.mxu3 %v1833_v46  ;;  %805 = vmatpush.bf16.msrb.mxu1 %v1837_v48  ;;  %v2370_v48 = vld [vmem:[#allocation4 + $0x40] sm:$0xf0] }
  0xae   :  { %v258_v62 = vadd.f32 %v2724_v1, %v250_v56  ;;  %v1945_v56 = vor.u32 %v2389_v51, %v1942_v53  ;;  %v1865_v49 = vor.u32 %v2370_v48, %v1864_v47  ;;  %v2769_v51 = vperm.slane %v414_v43, 0  ;;  %v2397_v53 = vld [vmem:[#allocation4 + $0x118] sm:$0xf0]  ;;  %v2440_v47 = vld [vmem:[#allocation6 + $0xf4] sm:$0xf] }
  0xaf   :  { %v2146_v48 = vld [vmem:[#allocation6 + $0xf8] sm:$0xf0] }
  0xb0   :  { %v262_v2 = vmax.f32 %v258_v62, 0.0  ;;  %v2385_v62 = vld [vmem:[#allocation4 + $0xb8] sm:$0xf0] }
  0xb3   :  { %v2750_v57 = vpop.f32.mrf.mxu0 }
  0xb4   :  { %239 = vst [vmem:[%s3262_s14 + $0x58] sm:$0xff] %v2750_v57  ;;  %v251_v59 = vmul.f32 %v2708_v60, %v2750_v57  ;;  %v1976_v60 = vld [vmem:[#allocation4 + $0x120] sm:$0xf] }
  0xb5   :  { %v1977_v15 = vor.u32 %v2399_v14, %v1976_v60  ;;  %v2021_v60 = vor.u32 %v2409_v12, %v2020_v11  ;;  %v2441_v14 = vld [vmem:[#allocation6 + $0xf4] sm:$0xf0]  ;;  %v2431_v11 = vld [vmem:[#allocation6 + $0xa4] sm:$0xf0] }
  0xb6   :  { %v259_v63 = vadd.f32 %v2724_v1, %v251_v59  ;;  %v2398_v1 = vld [vmem:[#allocation4 + $0x124] sm:$0xf]  ;;  %v1924_v59 = vld [vmem:[#allocation4 + $0xb0] sm:$0xf] }
  0xb7   :  { %v1981_v17 = vor.u32 %v2398_v1, %v1978_v16  ;;  %782 = vmatpush.bf16.msrb.mxu0 %v1977_v15  ;;  %v2145_v15 = vor.u32 %v2441_v14, %v2144_v13  ;;  %v1900_v1 = vld [vmem:[#allocation4 + $0x80] sm:$0xf]  ;;  %v2379_v16 = vld [vmem:[#allocation4 + $0x88] sm:$0xf0] }
  0xb8   :  { %v263_v3 = vmax.f32 %v259_v63, 0.0  ;;  %v1925_v63 = vor.u32 %v2385_v62, %v1924_v59 }
  0xb9   :  { %820 = vmatpush.bf16.msrb.mxu2 %v1981_v17  ;;  %v1901_v17 = vor.u32 %v2379_v16, %v1900_v1  ;;  %v2364_v1 = vld [vmem:[#allocation4 + $0x10] sm:$0xf0]  ;;  %v1948_v16 = vld [vmem:[#allocation4 + $0xe0] sm:$0xf] }
  0xba   :  { %v265_v4 = vpack.c.bf16 %v263_v3, %v262_v2  ;;  %v1928_v2 = vld [vmem:[#allocation4 + $0xc0] sm:$0xf]  ;;  %v2387_v3 = vld [vmem:[#allocation4 + $0xc8] sm:$0xf0]  ;;  %836 = vmatpush.bf16.msrb.mxu3 %v1925_v63  ;;  %v2112_v63 = vld [vmem:[#allocation6 + $0xb0] sm:$0xf]  ;;  %v1949_v25 = vor.u32 %v2391_v18, %v1948_v16 }
  0xbb   :  { %783 = vmatpush.bf16.msrb.mxu0 %v1965_v27  ;;  %v1929_v5 = vor.u32 %v2387_v3, %v1928_v2  ;;  %v400_v27 = vld [vmem:[%s3253_s5] sm:$0x3]  ;;  %v2433_v2 = vld [vmem:[#allocation6 + $0xb4] sm:$0xf0]  ;;  %v2432_v16 = vld [vmem:[#allocation6 + $0xb4] sm:$0xf] }
  0xbc   :  { %375 = vmatmul.bf16.gmra.mxu1 %v265_v4  ;;  %394 = vmatmul.bf16.gmra.mxu2 %v265_v4  ;;  %v2386_v4 = vld [vmem:[#allocation4 + $0xc4] sm:$0xf]  ;;  %v2763_v38 = vperm.slane %v400_v27, 0  ;;  %v2771_v59 = vperm.slane %v400_v27, 1  ;;  %v2113_v3 = vor.u32 %v2433_v2, %v2112_v63 }
  0xbd   :  { %821 = vmatpush.bf16.msrb.mxu2 %v1969_v30  ;;  %v1933_v7 = vor.u32 %v2386_v4, %v1930_v6  ;;  %v2403_v30 = vld [vmem:[#allocation4 + $0x148] sm:$0xf0]  ;;  %v1852_v4 = vld [vmem:[#allocation4 + $0x20] sm:$0xf]  ;;  %v1960_v6 = vld [vmem:[#allocation4 + $0xf8] sm:$0xf] }
  0xbe   :  { %837 = vmatpush.bf16.msrb.mxu3 %v1913_v10  ;;  %v1997_v32 = vor.u32 %v2403_v30, %v1996_v29  ;;  %v2104_v10 = vld [vmem:[#allocation6 + $0xa0] sm:$0xf] }
  0xbf   :  { %784 = vmatpush.bf16.msrb.mxu0 %v1953_v40  ;;  %v1984_v40 = vld [vmem:[#allocation4 + $0x128] sm:$0xf]  ;;  %v2105_v14 = vor.u32 %v2431_v11, %v2104_v10 }
  0xc0   :  { %v1985_v44 = vor.u32 %v2400_v41, %v1984_v40  ;;  %v2427_v40 = vld [vmem:[#allocation6 + $0x84] sm:$0xf0] }
  0xc1   :  { %822 = vmatpush.bf16.msrb.mxu2 %v1957_v42  ;;  %v2120_v42 = vld [vmem:[#allocation6 + $0xc0] sm:$0xf] }
  0xc2   :  { %838 = vmatpush.bf16.msrb.mxu3 %v1901_v17  ;;  %v2121_v46 = vor.u32 %v2435_v45, %v2120_v42 }
  0xc3   :  { %785 = vmatpush.bf16.msrb.mxu0 %v1941_v52  ;;  %v1972_v52 = vld [vmem:[#allocation4 + $0x110] sm:$0xf] }
  0xc4   :  { %v1973_v62 = vor.u32 %v2397_v53, %v1972_v52  ;;  %v2138_v52 = vld [vmem:[#allocation6 + $0xe8] sm:$0xf0] }
  0xc5   :  { %823 = vmatpush.bf16.msrb.mxu2 %v1945_v56 }
  0xc6   :  { %839 = vmatpush.bf16.msrb.mxu3 %v1889_v28 }
  0xc7   :  { %786 = vmatpush.bf16.msrb.mxu0 %v1929_v5  ;;  %v2367_v5 = vld [vmem:[#allocation4 + $0x28] sm:$0xf0] }
  0xc8   :  { %v1853_v8 = vor.u32 %v2367_v5, %v1852_v4  ;;  %v2436_v4 = vld [vmem:[#allocation6 + $0xd4] sm:$0xf]  ;;  %v2130_v5 = vld [vmem:[#allocation6 + $0xd8] sm:$0xf0] }
  0xc9   :  { %824 = vmatpush.bf16.msrb.mxu2 %v1933_v7 }
  0xca   :  { %840 = vmatpush.bf16.msrb.mxu3 %v1877_v39  ;;  %v1937_v39 = vor.u32 %v2388_v36, %v1936_v35 }
  0xcb   :  { %855 = vmatpush.bf16.msra.mxu0 %v2021_v60  ;;  %v1961_v60 = vor.u32 %v2394_v9, %v1960_v6  ;;  %v2133_v9 = vor.u32 %v2436_v4, %v2130_v5 }
  0xcd   :  { %1171 = vmatpush.bf16.msra.mxu2 %v2145_v15  ;;  %v1840_v15 = vld [vmem:[#allocation4 + $0x8] sm:$0xf] }
  0xce   :  { %841 = vmatpush.bf16.msrb.mxu3 %v1865_v49  ;;  %v1841_v17 = vor.u32 %v2364_v1, %v1840_v15  ;;  %v2149_v49 = vor.u32 %v2440_v47, %v2146_v48  ;;  %v2420_v47 = vld [vmem:[#allocation6 + $0x54] sm:$0xf]  ;;  %v2066_v48 = vld [vmem:[#allocation6 + $0x58] sm:$0xf0] }
  0xcf   :  { %856 = vmatpush.bf16.msra.mxu0 %v2009_v22 }
  0xd1   :  { %1172 = vmatpush.bf16.msra.mxu2 %v2137_v24  ;;  %v2429_v24 = vld [vmem:[#allocation6 + $0x94] sm:$0xf0] }
  0xd2   :  { %842 = vmatpush.bf16.msrb.mxu3 %v1853_v8  ;;  %v2097_v29 = vor.u32 %v2429_v24, %v2096_v23  ;;  %v2098_v23 = vld [vmem:[#allocation6 + $0x98] sm:$0xf0] }
  0xd3   :  { %857 = vmatpush.bf16.msra.mxu0 %v1997_v32 }
  0xd5   :  { %1173 = vmatpush.bf16.msra.mxu2 %v2129_v34 }
  0xd6   :  { %843 = vmatpush.bf16.msrb.mxu3 %v1841_v17  ;;  %v2114_v17 = vld [vmem:[#allocation6 + $0xb8] sm:$0xf0] }
  0xd7   :  { %858 = vmatpush.bf16.msra.mxu0 %v1985_v44  ;;  %v2117_v18 = vor.u32 %v2432_v16, %v2114_v17  ;;  %v95_v16 = vlaneseq }
  0xd9   :  { %1174 = vmatpush.bf16.msra.mxu2 %v2121_v46 }
  0xdb   :  { %859 = vmatpush.bf16.msra.mxu0 %v1973_v62 }
  0xdd   :  { %1175 = vmatpush.bf16.msra.mxu2 %v2113_v3 }
  0xdf   :  { %860 = vmatpush.bf16.msra.mxu0 %v1961_v60  ;;  %v2122_v60 = vld [vmem:[#allocation6 + $0xc8] sm:$0xf0] }
  0xe1   :  { %1176 = vmatpush.bf16.msra.mxu2 %v2105_v14 }
  0xe3   :  { %861 = vmatpush.bf16.msra.mxu0 %v1949_v25  ;;  %v2426_v25 = vld [vmem:[#allocation6 + $0x84] sm:$0xf] }
  0xe5   :  { %1177 = vmatpush.bf16.msra.mxu2 %v2097_v29  ;;  %v931_v29 = vmul.f32 %v2719_v0, %v2740_v54 }
  0xe7   :  { %862 = vmatpush.bf16.msra.mxu0 %v1937_v39  ;;  %v2425_v39 = vld [vmem:[#allocation6 + $0x74] sm:$0xf0] }
 0x129   :  { %v371_v37 = vpop.f32.mrf.mxu1 }
 0x12a   :  { %v406_v50 = vmul.f32 %v2763_v38, %v371_v37  ;;  %v2088_v37 = vld [vmem:[#allocation6 + $0x80] sm:$0xf] }
 0x12b   :  { %v2089_v43 = vor.u32 %v2427_v40, %v2088_v37  ;;  %v2082_v37 = vld [vmem:[#allocation6 + $0x78] sm:$0xf0] }
 0x12c   :  { %v420_v12 = vadd.f32 %v2769_v51, %v406_v50  ;;  %v2438_v50 = vld [vmem:[#allocation6 + $0xe4] sm:$0xf] }
 0x12d   :  { %1178 = vmatpush.bf16.msra.mxu2 %v2089_v43  ;;  %v2141_v63 = vor.u32 %v2438_v50, %v2138_v52  ;;  %v2069_v50 = vor.u32 %v2420_v47, %v2066_v48  ;;  %v2421_v52 = vld [vmem:[#allocation6 + $0x54] sm:$0xf0] }
 0x12e   :  { %v428_v26 = vmax.f32 %v420_v12, 0.0 }
 0x12f   :  { %v390_v56 = vpop.f32.mrf.mxu2 }
 0x130   :  { %v407_v20 = vmul.f32 %v2771_v59, %v390_v56 }
 0x131   :  { %v373_v7 = vpop.f32.mrf.mxu1 }
 0x132   :  { %v408_v13 = vmul.f32 %v2763_v38, %v373_v7  ;;  %v421_v30 = vadd.f32 %v417_v21, %v407_v20  ;;  %v2430_v20 = vld [vmem:[#allocation6 + $0xa4] sm:$0xf] }
 0x134   :  { %v422_v22 = vadd.f32 %v2769_v51, %v408_v13  ;;  %v429_v41 = vmax.f32 %v421_v30, 0.0 }
 0x136   :  { %v430_v27 = vmax.f32 %v422_v22, 0.0  ;;  %v2106_v22 = vld [vmem:[#allocation6 + $0xa8] sm:$0xf0] }
 0x137   :  { %v392_v28 = vpop.f32.mrf.mxu2 }
 0x138   :  { %v409_v31 = vmul.f32 %v2771_v59, %v392_v28  ;;  %v2778_v32 = vpack.c.bf16 %v430_v27, %v428_v26  ;;  %v2090_v26 = vld [vmem:[#allocation6 + $0x88] sm:$0xf0]  ;;  %v933_v28 = vmul.f32 %v2719_v0, %v2750_v57  ;;  %v2424_v57 = vld [vmem:[#allocation6 + $0x74] sm:$0xf]  ;;  %v2080_v0 = vld [vmem:[#allocation6 + $0x70] sm:$0xf] }
 0x139   :  { %v376_v33 = vpop.f32.mrf.mxu1  ;;  %v2093_v27 = vor.u32 %v2426_v25, %v2090_v26  ;;  %v2085_v54 = vor.u32 %v2424_v57, %v2082_v37  ;;  %v2081_v40 = vor.u32 %v2425_v39, %v2080_v0  ;;  %v2809_v26 = vshrl.u32 %v95_v16, 7 }
 0x13a   :  { %v423_v34 = vadd.f32 %v417_v21, %v409_v31  ;;  %768 = vmatmul.bf16.vlgmr.msra.gmra.mxu3 %v2778_v32  ;;  %806 = vmatmul.bf16.vlgmr.msrb.gmra.mxu1 %v2778_v32  ;;  %v410_v44 = vmul.f32 %v2763_v38, %v376_v33  ;;  %v947_v30 = vadd.f32 %v2728_v19, %v933_v28  ;;  %v2410_v28 = vld [vmem:[#allocation6 + $0x4] sm:$0xf] }
 0x13b   :  { %v945_v31 = vadd.f32 %v2728_v19, %v931_v29  ;;  %1190 = vmatpush.bf16.msra.mxu3 %v2085_v54  ;;  %1152 = vmatpush.bf16.msra.mxu1 %v2081_v40  ;;  %v2422_v19 = vld [vmem:[#allocation6 + $0x64] sm:$0xf]  ;;  %v2026_v29 = vld [vmem:[#allocation6 + $0x8] sm:$0xf0]  ;;  %vm878_vm2 = vcmp.lt.s32.totalorder %v2809_v26, 1  ;;  %v97_v47 = vadd.s32 8, %v2809_v26 }
 0x13c   :  { %v431_v42 = vmax.f32 %v423_v34, 0.0  ;;  %v424_v56 = vadd.f32 %v2769_v51, %v410_v44  ;;  %v955_v33 = vmax.f32 %v947_v30, 0.0  ;;  %v2423_v44 = vld [vmem:[#allocation6 + $0x64] sm:$0xf0]  ;;  %v104_v30 = vand.u32 15, %v2809_v26 }
 0x13d   :  { %v953_v34 = vmax.f32 %v945_v31, 0.0  ;;  %v2029_v31 = vor.u32 %v2410_v28, %v2026_v29  ;;  %v98_v48 = vadd.s32 16, %v2809_v26  ;;  %vm895_vm3 = vcmp.lt.s32.totalorder %v2809_v26, 7 }
 0x13e   :  { %v437_v45 = vpack.c.bf16 %v431_v42, %v429_v41  ;;  %v432_v6 = vmax.f32 %v424_v56, 0.0  ;;  %v2074_v41 = vld [vmem:[#allocation6 + $0x68] sm:$0xf0]  ;;  %v2072_v42 = vld [vmem:[#allocation6 + $0x60] sm:$0xf]  ;;  %vm148_vm1 = vcmp.ne.s32.totalorder %v104_v30, 0 }
 0x13f   :  { %v395_v46 = vpop.f32.mrf.mxu2  ;;  %v2077_v43 = vor.u32 %v2422_v19, %v2074_v41  ;;  %v2418_v56 = vld [vmem:[#allocation6 + $0x44] sm:$0xf]  ;;  %v2591_v41 = vmov 0.0   ;;  %v2236_v30 = vld [vmem:[%s3261_s13 + $0xa8] sm:$0xf] }
 0x140   :  { %787 = vmatmul.bf16.vlgmr.msrb.gmra.mxu0 %v437_v45  ;;  %825 = vmatmul.bf16.vlgmr.msrb.gmra.mxu2 %v437_v45  ;;  %v411_v2 = vmul.f32 %v2771_v59, %v395_v46 }
 0x141   :  { %v378_v53 = vpop.f32.mrf.mxu1  ;;  %1209 = vmatpush.bf16.msrb.mxu0 %v2149_v49  ;;  %1191 = vmatpush.bf16.msra.mxu3 %v2077_v43  ;;  %v2064_v49 = vld [vmem:[#allocation6 + $0x50] sm:$0xf] }
 0x142   :  { %v412_v62 = vmul.f32 %v2763_v38, %v378_v53  ;;  %v425_v10 = vadd.f32 %v417_v21, %v411_v2  ;;  %v2434_v38 = vld [vmem:[#allocation6 + $0xc4] sm:$0xf]  ;;  %v2065_v53 = vor.u32 %v2421_v52, %v2064_v49 }
 0x143   :  { %v2125_v14 = vor.u32 %v2434_v38, %v2122_v60  ;;  %v2042_v38 = vld [vmem:[#allocation6 + $0x28] sm:$0xf0] }
 0x144   :  { %v426_v3 = vadd.f32 %v2769_v51, %v412_v62  ;;  %v433_v15 = vmax.f32 %v425_v10, 0.0  ;;  %v2058_v62 = vld [vmem:[#allocation6 + $0x48] sm:$0xf0] }
 0x145   :  { %1210 = vmatpush.bf16.msrb.mxu0 %v2141_v63  ;;  %1192 = vmatpush.bf16.msra.mxu3 %v2069_v50  ;;  %v2056_v63 = vld [vmem:[#allocation6 + $0x40] sm:$0xf]  ;;  %v2061_v2 = vor.u32 %v2418_v56, %v2058_v62 }
 0x146   :  { %v434_v7 = vmax.f32 %v426_v3, 0.0  ;;  %v2419_v3 = vld [vmem:[#allocation6 + $0x44] sm:$0xf0] }
 0x147   :  { %v397_v8 = vpop.f32.mrf.mxu2  ;;  %v2057_v4 = vor.u32 %v2419_v3, %v2056_v63 }
 0x148   :  { %v413_v11 = vmul.f32 %v2771_v59, %v397_v8  ;;  %v438_v12 = vpack.c.bf16 %v434_v7, %v432_v6  ;;  %v2109_v59 = vor.u32 %v2430_v20, %v2106_v22  ;;  %v2416_v7 = vld [vmem:[#allocation6 + $0x34] sm:$0xf]  ;;  %v2050_v8 = vld [vmem:[#allocation6 + $0x38] sm:$0xf0] }
 0x149   :  { %1211 = vmatpush.bf16.msrb.mxu0 %v2133_v9  ;;  %1193 = vmatpush.bf16.msra.mxu3 %v2061_v2  ;;  %v2048_v9 = vld [vmem:[#allocation6 + $0x30] sm:$0xf]  ;;  %v2053_v10 = vor.u32 %v2416_v7, %v2050_v8  ;;  %v2412_v22 = vld [vmem:[#allocation6 + $0x14] sm:$0xf]  ;;  %v111_v2 = vand.u32 15, %v97_v47  ;;  %v118_v7 = vand.u32 15, %v98_v48 }
 0x14a   :  { %v427_v13 = vadd.f32 %v417_v21, %v413_v11  ;;  %773 = vmatmul.bf16.gmra.mxu3 %v438_v12  ;;  %811 = vmatmul.bf16.gmra.mxu1 %v438_v12  ;;  %v2428_v21 = vld [vmem:[#allocation6 + $0x94] sm:$0xf]  ;;  %v2417_v11 = vld [vmem:[#allocation6 + $0x34] sm:$0xf0] }
 0x14b   :  { %v2101_v24 = vor.u32 %v2428_v21, %v2098_v23  ;;  %v2032_v23 = vld [vmem:[#allocation6 + $0x10] sm:$0xf]  ;;  %vm161_vm4 = vcmp.ne.s32.totalorder %v111_v2, 15  ;;  %vm150_vm5 = vcmp.ne.s32.totalorder %v118_v7, 0  ;;  %v2334_v2 = vld [vmem:[%s3261_s13 + $0x174] sm:$0xf0] }
 0x14c   :  { %v435_v51 = vmax.f32 %v427_v13, 0.0  ;;  %v2414_v13 = vld [vmem:[#allocation6 + $0x24] sm:$0xf] }
 0x14d   :  { %1212 = vmatpush.bf16.msrb.mxu0 %v2125_v14  ;;  %1194 = vmatpush.bf16.msra.mxu3 %v2053_v10  ;;  %v2045_v60 = vor.u32 %v2414_v13, %v2042_v38  ;;  %v2040_v14 = vld [vmem:[#allocation6 + $0x20] sm:$0xf]  ;;  %v99_v10 = vadd.s32 24, %v2809_v26  ;;  %v2848_v13 = vperm.slane %v2703_v58, 0  ;;  %v2851_v38 = vsel %vm161_vm4, 1.0, %v2591_v41 }
 0x14e   :  { %v439_v1 = vpack.c.bf16 %v435_v51, %v433_v15  ;;  %v2415_v15 = vld [vmem:[#allocation6 + $0x24] sm:$0xf0] }
 0x150   :  { %792 = vmatmul.bf16.gmra.mxu0 %v439_v1  ;;  %830 = vmatmul.bf16.gmra.mxu2 %v439_v1 }
 0x151   :  { %1213 = vmatpush.bf16.msrb.mxu0 %v2117_v18  ;;  %1195 = vmatpush.bf16.msra.mxu3 %v2045_v60 }
 0x155   :  { %1214 = vmatpush.bf16.msrb.mxu0 %v2109_v59  ;;  %v2034_v59 = vld [vmem:[#allocation6 + $0x18] sm:$0xf0] }
 0x156   :  { %v2037_v21 = vor.u32 %v2412_v22, %v2034_v59  ;;  %v2865_v22 = vperm.slane %v2713_v61, 0  ;;  %v2464_v61 = vld [vmem:[%s3261_s13 + $0xb0] sm:$0xf0] }
 0x158   :  { %1196 = vmatpush.bf16.msra.mxu3 %v2037_v21 }
 0x159   :  { %1215 = vmatpush.bf16.msrb.mxu0 %v2101_v24  ;;  %v2413_v24 = vld [vmem:[#allocation6 + $0x14] sm:$0xf0] }
 0x15a   :  { %844 = vmatmul.bf16.vlgmr.msrb.gmra.mxu3 %v2778_v32  ;;  %v959_v32 = vpack.c.bf16 %v955_v33, %v953_v34  ;;  %v2033_v25 = vor.u32 %v2413_v24, %v2032_v23  ;;  %v2024_v33 = vld [vmem:[#allocation6] sm:$0xf]  ;;  %v2411_v34 = vld [vmem:[#allocation6 + $0x4] sm:$0xf0] }
 0x15b   :  { %v2025_v57 = vor.u32 %v2411_v34, %v2024_v33 }
 0x15c   :  { %1197 = vmatpush.bf16.msra.mxu3 %v2029_v31  ;;  %v2463_v31 = vld [vmem:[%s3261_s13 + $0xac] sm:$0xf] }
 0x15d   :  { %1216 = vmatpush.bf16.msrb.mxu0 %v2093_v27 }
 0x160   :  { %863 = vmatmul.bf16.vlgmr.msra.gmra.mxu0 %v437_v45  ;;  %1179 = vmatmul.bf16.vlgmr.msra.gmra.mxu2 %v2742_v55  ;;  %v2073_v45 = vor.u32 %v2423_v44, %v2072_v42  ;;  %v2819_v42 = vsel %vm148_vm1, 1.0, %v2591_v41 }
 0x162   :  { %1153 = vmatpush.bf16.msra.mxu1 %v2073_v45 }
 0x166   :  { %1154 = vmatpush.bf16.msra.mxu1 %v2065_v53 }
 0x16a   :  { %849 = vmatmul.bf16.gmra.mxu3 %v438_v12  ;;  %1155 = vmatpush.bf16.msra.mxu1 %v2057_v4  ;;  %v2049_v12 = vor.u32 %v2417_v11, %v2048_v9 }
 0x16e   :  { %1156 = vmatpush.bf16.msra.mxu1 %v2049_v12 }
 0x170   :  { %868 = vmatmul.bf16.gmra.mxu0 %v439_v1  ;;  %1184 = vmatmul.bf16.gmra.mxu2 %v959_v32  ;;  %v2041_v1 = vor.u32 %v2415_v15, %v2040_v14  ;;  %v125_v14 = vand.u32 15, %v99_v10  ;;  %v2854_v15 = vsel %vm150_vm5, 1.0, %v2591_v41  ;;  %v2214_v10 = vld [vmem:[%s3261_s13 + $0x84] sm:$0xf0] }
 0x172   :  { %1157 = vmatpush.bf16.msra.mxu1 %v2041_v1  ;;  %vm2868_vm6 = vcmp.ne.s32.totalorder %v125_v14, 15  ;;  %v2322_v14 = vld [vmem:[%s3261_s13 + $0x15c] sm:$0xf0] }
 0x176   :  { %1158 = vmatpush.bf16.msra.mxu1 %v2033_v25 }
 0x17a   :  { %1159 = vmatpush.bf16.msra.mxu1 %v2025_v57  ;;  %v2238_v57 = vld [vmem:[%s3261_s13 + $0xb4] sm:$0xf0] }
 0x180   :  { %1217 = vmatmul.bf16.vlgmr.msrb.gmra.mxu0 %v2742_v55 }
 0x190   :  { %1222 = vmatmul.bf16.gmra.mxu0 %v959_v32 }
 0x1b7   :  { %v807_v20 = vpop.f32.mrf.mxu1 }
 0x1bd   :  { %v2797_v35 = vpop.f32.mrf.mxu3  ;;  %v2799_v36 = vpop.f32.mrf.mxu0 }
 0x1be   :  { %v789_v32 = vadd.f32 %v2799_v36, %v2797_v35 }
 0x1bf   :  { %v809_v19 = vpop.f32.mrf.mxu1 }
 0x1c0   :  { %v874_v40 = vrot.slane %v789_v32, 7  ;;  %v2237_v32 = vor.u32 %v2464_v61, %v2236_v30  ;;  %v2308_v61 = vld [vmem:[%s3261_s13 + $0x138] sm:$0xf] }
 0x1c2   :  { %1588 = vmatpush.bf16.msrb.mxu1 %v2237_v32  ;;  %v2310_v32 = vld [vmem:[%s3261_s13 + $0x144] sm:$0xf0] }
 0x1c3   :  { %v826_v51 = vpop.f32.mrf.mxu2 }
 0x1c4   :  { %v827_v50 = vadd.f32 %v826_v51, %v807_v20 }
 0x1c5   :  { %v2801_v55 = vpop.f32.mrf.mxu3  ;;  %v2803_v46 = vpop.f32.mrf.mxu0 }
 0x1c6   :  { %v791_v3 = vadd.f32 %v2803_v46, %v2801_v55 }
 0x1c7   :  { %v812_v4 = vpop.f32.mrf.mxu1 }
 0x1c8   :  { %v875_v55 = vrot.slane %v791_v3, 7 }
 0x1ca   :  { %v881_v1 = vsel %vm878_vm2, %v874_v40, %v875_v55 }
 0x1cb   :  { %v828_v39 = vpop.f32.mrf.mxu2 }
 0x1cc   :  { %v829_v12 = vadd.f32 %v828_v39, %v809_v19  ;;  %v2241_v19 = vor.u32 %v2463_v31, %v2238_v57  ;;  %v2482_v31 = vld [vmem:[%s3261_s13 + $0x140] sm:$0xf0] }
 0x1cd   :  { %v2805_v5 = vpop.f32.mrf.mxu3  ;;  %v2807_v6 = vpop.f32.mrf.mxu0 }
 0x1ce   :  { %v2834_v56 = vadd.f32 %v2807_v6, %v2805_v5  ;;  %1626 = vmatpush.bf16.msrb.mxu3 %v2241_v19  ;;  %v2190_v19 = vld [vmem:[%s3261_s13 + $0x54] sm:$0xf0] }
 0x1cf   :  { %v814_v59 = vpop.f32.mrf.mxu1 }
 0x1d0   :  { %v876_v11 = vrot.slane %v2834_v56, 7 }
 0x1d2   :  { %v880_v51 = vsel %vm878_vm2, %v875_v55, %v876_v11  ;;  %v2485_v55 = vld [vmem:[%s3261_s13 + $0x158] sm:$0xf0] }
 0x1d3   :  { %v831_v62 = vpop.f32.mrf.mxu2  ;;  %v885_v23 = vmul.f32 %v2854_v15, %v880_v51 }
 0x1d4   :  { %v832_v21 = vadd.f32 %v831_v62, %v812_v4 }
 0x1d5   :  { %v776_v17 = vpop.f32.mrf.mxu3  ;;  %v795_v18 = vpop.f32.mrf.mxu0 }
 0x1d6   :  { %v2811_v27 = vadd.f32 %v795_v18, %v776_v17  ;;  %v888_v17 = vadd.f32 %v881_v1, %v829_v12 }
 0x1d8   :  { %v877_v54 = vrot.slane %v2811_v27, 7  ;;  %v2212_v27 = vld [vmem:[%s3261_s13 + $0x78] sm:$0xf] }
 0x1da   :  { %v882_v35 = vsel %vm878_vm2, %v877_v54, %v874_v40 }
 0x1db   :  { %v883_v43 = vmul.f32 %v2819_v42, %v882_v35  ;;  %v833_v58 = vpop.f32.mrf.mxu2  ;;  %v2460_v35 = vld [vmem:[%s3261_s13 + $0x94] sm:$0xf] }
 0x1dc   :  { %v834_v33 = vadd.f32 %v833_v58, %v814_v59 }
 0x1dd   :  { %v845_v37 = vpop.f32.mrf.mxu3  ;;  %v864_v0 = vpop.f32.mrf.mxu0  ;;  %v887_v63 = vadd.f32 %v883_v43, %v827_v50  ;;  %v2226_v43 = vld [vmem:[%s3261_s13 + $0x9c] sm:$0xf0]  ;;  %v2488_v50 = vld [vmem:[%s3261_s13 + $0x170] sm:$0xf0] }
 0x1de   :  { %v2825_v36 = vadd.f32 %v864_v0, %v845_v37  ;;  %v2224_v37 = vld [vmem:[%s3261_s13 + $0x90] sm:$0xf]  ;;  %v2461_v0 = vld [vmem:[%s3261_s13 + $0x98] sm:$0xf0] }
 0x1df   :  { %v2225_v48 = vor.u32 %v2461_v0, %v2224_v37  ;;  %v2188_v37 = vld [vmem:[%s3261_s13 + $0x48] sm:$0xf]  ;;  %v2452_v0 = vld [vmem:[%s3261_s13 + $0x50] sm:$0xf0] }
 0x1e0   :  { %v891_v52 = vrot.slane %v2825_v36, 1 }
 0x1e1   :  { %1589 = vmatpush.bf16.msrb.mxu1 %v2225_v48  ;;  %v2478_v48 = vld [vmem:[%s3261_s13 + $0x124] sm:$0xf] }
 0x1e5   :  { %v847_v44 = vpop.f32.mrf.mxu3  ;;  %v866_v45 = vpop.f32.mrf.mxu0 }
 0x1e6   :  { %v867_v49 = vadd.f32 %v866_v45, %v847_v44  ;;  %v889_v44 = vadd.f32 %v885_v23, %v832_v21  ;;  %v2904_v45 = vsel %vm2868_vm6, 1.0, %v2591_v41  ;;  %v2229_v41 = vor.u32 %v2460_v35, %v2226_v43  ;;  %v2296_v43 = vld [vmem:[%s3261_s13 + $0x120] sm:$0xf] }
 0x1e8   :  { %v892_v53 = vrot.slane %v867_v49, 1  ;;  %v2332_v49 = vld [vmem:[%s3261_s13 + $0x168] sm:$0xf]  ;;  %1627 = vmatpush.bf16.msrb.mxu3 %v2229_v41  ;;  %v2448_v41 = vld [vmem:[%s3261_s13 + $0x34] sm:$0xf] }
 0x1e9   :  { %v2333_v62 = vor.u32 %v2488_v50, %v2332_v49  ;;  %v2298_v49 = vld [vmem:[%s3261_s13 + $0x12c] sm:$0xf0] }
 0x1ea   :  { %v898_v8 = vsel %vm895_vm3, %v891_v52, %v892_v53  ;;  %v2301_v50 = vor.u32 %v2478_v48, %v2298_v49  ;;  %v2486_v48 = vld [vmem:[%s3261_s13 + $0x160] sm:$0xf0] }
 0x1eb   :  { %v904_v9 = vadd.f32 %v898_v8, %v887_v63  ;;  %v2487_v63 = vld [vmem:[%s3261_s13 + $0x16c] sm:$0xf]  ;;  %v2458_v8 = vld [vmem:[%s3261_s13 + $0x80] sm:$0xf0]  ;;  %1607 = vmatpush.bf16.msrb.mxu2 %v2333_v62 }
 0x1ec   :  { %v2337_v7 = vor.u32 %v2487_v63, %v2334_v2  ;;  %v2178_v63 = vld [vmem:[%s3261_s13 + $0x3c] sm:$0xf0] }
 0x1ed   :  { %908 = vst [vmem:[%s3262_s14 + $0x8] sm:$0xff] %v904_v9  ;;  %v850_v5 = vpop.f32.mrf.mxu3  ;;  %v869_v6 = vpop.f32.mrf.mxu0  ;;  %v926_v20 = vmul.f32 %v2848_v13, %v904_v9  ;;  %v2457_v9 = vld [vmem:[%s3261_s13 + $0x7c] sm:$0xf]  ;;  %v2181_v2 = vor.u32 %v2448_v41, %v2178_v63  ;;  %v1228_v63 = vld [vmem:[%s3259_s11] sm:$0x3] }
 0x1ee   :  { %v870_v46 = vadd.f32 %v869_v6, %v850_v5  ;;  %1645 = vmatpush.bf16.msra.mxu0 %v2337_v7  ;;  %v2286_v7 = vld [vmem:[%s3261_s13 + $0x114] sm:$0xf0] }
 0x1ef   :  { %v940_v40 = vadd.f32 %v2865_v22, %v926_v20 }
 0x1f0   :  { %v893_v60 = vrot.slane %v870_v46, 1  ;;  %v2213_v46 = vor.u32 %v2458_v8, %v2212_v27  ;;  %v2284_v27 = vld [vmem:[%s3261_s13 + $0x108] sm:$0xf] }
 0x1f1   :  { %v948_v36 = vmax.f32 %v940_v40, 0.0  ;;  %v2451_v40 = vld [vmem:[%s3261_s13 + $0x4c] sm:$0xf] }
 0x1f2   :  { %v897_v16 = vsel %vm895_vm3, %v892_v53, %v893_v60  ;;  %v879_v53 = vsel %vm878_vm2, %v876_v11, %v877_v54  ;;  %1590 = vmatpush.bf16.msrb.mxu1 %v2213_v46  ;;  %v2193_v35 = vor.u32 %v2451_v40, %v2190_v19  ;;  %v2472_v46 = vld [vmem:[%s3261_s13 + $0xf4] sm:$0xf]  ;;  %v1180_v19 = vpop.f32.mrf.mxu2 }
 0x1f3   :  { %v901_v18 = vmul.f32 %v2851_v38, %v897_v16  ;;  %v890_v3 = vadd.f32 %v879_v53, %v834_v33  ;;  %v2217_v16 = vor.u32 %v2457_v9, %v2214_v10  ;;  %v2481_v33 = vld [vmem:[%s3261_s13 + $0x13c] sm:$0xf]  ;;  %v2176_v53 = vld [vmem:[%s3261_s13 + $0x30] sm:$0xf]  ;;  %v2164_v9 = vld [vmem:[%s3261_s13 + $0x18] sm:$0xf] }
 0x1f4   :  { %v2313_v57 = vor.u32 %v2481_v33, %v2310_v32  ;;  %v2446_v10 = vld [vmem:[%s3261_s13 + $0x20] sm:$0xf0]  ;;  %v2250_v33 = vld [vmem:[%s3261_s13 + $0xcc] sm:$0xf0]  ;;  %v2232_v32 = vld [vmem:[%s3261_s13 + $0x98] sm:$0xf] }
 0x1f5   :  { %v905_v25 = vadd.f32 %v901_v18, %v888_v17  ;;  %v852_v28 = vpop.f32.mrf.mxu3  ;;  %v871_v29 = vpop.f32.mrf.mxu0  ;;  %1628 = vmatpush.bf16.msrb.mxu3 %v2217_v16  ;;  %v2442_v16 = vld [vmem:[%s3261_s13 + $0x4] sm:$0xf] }
 0x1f6   :  { %v872_v34 = vadd.f32 %v871_v29, %v852_v28  ;;  %v2455_v28 = vld [vmem:[%s3261_s13 + $0x68] sm:$0xf0] }
 0x1f7   :  { %909 = vst [vmem:[%s3262_s14 + $0x20] sm:$0xff] %v905_v25  ;;  %v928_v39 = vmul.f32 %v2848_v13, %v905_v25  ;;  %v2200_v25 = vld [vmem:[%s3261_s13 + $0x60] sm:$0xf] }
 0x1f8   :  { %v894_v47 = vrot.slane %v872_v34, 1  ;;  %v2201_v29 = vor.u32 %v2455_v28, %v2200_v25  ;;  %v2309_v34 = vor.u32 %v2482_v31, %v2308_v61  ;;  %v2244_v28 = vld [vmem:[%s3261_s13 + $0xb0] sm:$0xf]  ;;  %v2466_v61 = vld [vmem:[%s3261_s13 + $0xc4] sm:$0xf] }
 0x1f9   :  { %v942_v56 = vadd.f32 %v2865_v22, %v928_v39  ;;  %v2189_v39 = vor.u32 %v2452_v0, %v2188_v37  ;;  %v2340_v0 = vld [vmem:[%s3261_s13 + $0x170] sm:$0xf] }
 0x1fa   :  { %v896_v54 = vsel %vm895_vm3, %v893_v60, %v894_v47  ;;  %v899_v4 = vsel %vm895_vm3, %v894_v47, %v891_v52  ;;  %v2320_v52 = vld [vmem:[%s3261_s13 + $0x150] sm:$0xf]  ;;  %v2484_v60 = vld [vmem:[%s3261_s13 + $0x154] sm:$0xf]  ;;  %1591 = vmatpush.bf16.msrb.mxu1 %v2201_v29 }
 0x1fb   :  { %v903_v11 = vmul.f32 %v2904_v45, %v899_v4  ;;  %v906_v5 = vadd.f32 %v896_v54, %v889_v44  ;;  %v950_v6 = vmax.f32 %v942_v56, 0.0  ;;  %v2321_v12 = vor.u32 %v2485_v55, %v2320_v52  ;;  %v2479_v44 = vld [vmem:[%s3261_s13 + $0x128] sm:$0xf0]  ;;  %v2449_v56 = vld [vmem:[%s3261_s13 + $0x38] sm:$0xf0] }
 0x1fc   :  { %v2325_v17 = vor.u32 %v2484_v60, %v2322_v14  ;;  %v2297_v47 = vor.u32 %v2479_v44, %v2296_v43  ;;  %v2177_v62 = vor.u32 %v2449_v56, %v2176_v53  ;;  %v2475_v54 = vld [vmem:[%s3261_s13 + $0x10c] sm:$0xf]  ;;  %v2272_v52 = vld [vmem:[%s3261_s13 + $0xf0] sm:$0xf]  ;;  %v2473_v55 = vld [vmem:[%s3261_s13 + $0xf8] sm:$0xf0] }
 0x1fd   :  { %v907_v51 = vadd.f32 %v903_v11, %v890_v3  ;;  %910 = vst [vmem:[%s3262_s14 + $0x38] sm:$0xff] %v906_v5  ;;  %v956_v1 = vpack.c.bf16 %v950_v6, %v948_v36  ;;  %1608 = vmatpush.bf16.msrb.mxu2 %v2321_v12  ;;  %v930_v18 = vmul.f32 %v2848_v13, %v906_v5  ;;  %v2476_v3 = vld [vmem:[%s3261_s13 + $0x110] sm:$0xf0]  ;;  %v2445_v11 = vld [vmem:[%s3261_s13 + $0x1c] sm:$0xf]  ;;  %v1218_v41 = vpop.f32.mrf.mxu0 }
 0x1fe   :  { %1646 = vmatpush.bf16.msra.mxu0 %v2325_v17  ;;  %1592 = vmatpush.bf16.msrb.mxu1 %v2189_v39  ;;  %v2285_v4 = vor.u32 %v2476_v3, %v2284_v27  ;;  %v2289_v8 = vor.u32 %v2475_v54, %v2286_v7  ;;  %v2165_v5 = vor.u32 %v2446_v10, %v2164_v9  ;;  %v2166_v36 = vld [vmem:[%s3261_s13 + $0x24] sm:$0xf0]  ;;  %v2274_v60 = vld [vmem:[%s3261_s13 + $0xfc] sm:$0xf0]  ;;  %v2489_v39 = vld [vmem:[%s3261_s13 + $0x178] sm:$0xf0]  ;;  %v1182_v10 = vpop.f32.mrf.mxu2 }
 0x1ff   :  { %911 = vst [vmem:[%s3262_s14 + $0x50] sm:$0xff] %v907_v51  ;;  %1160 = vmatmul.bf16.vlgmr.msra.gmra.mxu1 %v956_v1  ;;  %1198 = vmatmul.bf16.vlgmr.msra.gmra.mxu3 %v956_v1  ;;  %v932_v58 = vmul.f32 %v2848_v13, %v907_v51  ;;  %v944_v59 = vadd.f32 %v2865_v22, %v930_v18  ;;  %v2454_v13 = vld [vmem:[%s3261_s13 + $0x64] sm:$0xf]  ;;  %v2152_v51 = vld [vmem:[%s3261_s13] sm:$0xf] }
 0x200   :  { %v2169_v6 = vor.u32 %v2445_v11, %v2166_v36  ;;  %v2273_v12 = vor.u32 %v2473_v55, %v2272_v52  ;;  %v2277_v14 = vor.u32 %v2472_v46, %v2274_v60  ;;  %v2443_v1 = vld [vmem:[%s3261_s13 + $0x8] sm:$0xf0]  ;;  %v2341_v40 = vor.u32 %v2489_v39, %v2340_v0  ;;  %v2456_v53 = vld [vmem:[%s3261_s13 + $0x70] sm:$0xf0]  ;;  %v2196_v54 = vld [vmem:[%s3261_s13 + $0x50] sm:$0xf] }
 0x201   :  { %v946_v20 = vadd.f32 %v2865_v22, %v932_v58  ;;  %v952_v23 = vmax.f32 %v944_v59, 0.0  ;;  %v2202_v22 = vld [vmem:[%s3261_s13 + $0x6c] sm:$0xf0]  ;;  %1609 = vmatpush.bf16.msrb.mxu2 %v2309_v34  ;;  %v2153_v17 = vor.u32 %v2443_v1, %v2152_v51  ;;  %v2470_v59 = vld [vmem:[%s3261_s13 + $0xe0] sm:$0xf0]  ;;  %v2253_v34 = vor.u32 %v2466_v61, %v2250_v33 }
 0x202   :  { %v2205_v30 = vor.u32 %v2454_v13, %v2202_v22  ;;  %1647 = vmatpush.bf16.msra.mxu0 %v2313_v57  ;;  %1593 = vmatpush.bf16.msrb.mxu1 %v2177_v62  ;;  %v2154_v58 = vld [vmem:[%s3261_s13 + $0xc] sm:$0xf0]  ;;  %v2465_v13 = vld [vmem:[%s3261_s13 + $0xb8] sm:$0xf0]  ;;  %v2248_v22 = vld [vmem:[%s3261_s13 + $0xc0] sm:$0xf] }
 0x203   :  { %v954_v21 = vmax.f32 %v946_v20, 0.0  ;;  %v2157_v18 = vor.u32 %v2442_v16, %v2154_v58  ;;  %v2260_v20 = vld [vmem:[%s3261_s13 + $0xd8] sm:$0xf]  ;;  %v2245_v29 = vor.u32 %v2465_v13, %v2244_v28  ;;  %v2462_v57 = vld [vmem:[%s3261_s13 + $0xa0] sm:$0xf0]  ;;  %v3167_v51 = vperm.slane %v1228_v63, 1 }
 0x204   :  { %1629 = vmatpush.bf16.msrb.mxu3 %v2205_v30  ;;  %v2467_v30 = vld [vmem:[%s3261_s13 + $0xc8] sm:$0xf0]  ;;  %v2233_v37 = vor.u32 %v2462_v57, %v2232_v32  ;;  %v1242_v11 = vld [vmem:[%s3260_s12] sm:$0x3]  ;;  %v2480_v36 = vld [vmem:[%s3261_s13 + $0x130] sm:$0xf0] }
 0x205   :  { %v958_v24 = vpack.c.bf16 %v954_v21, %v952_v23  ;;  %1610 = vmatpush.bf16.msrb.mxu2 %v2297_v47  ;;  %v2469_v21 = vld [vmem:[%s3261_s13 + $0xdc] sm:$0xf]  ;;  %v2261_v23 = vor.u32 %v2470_v59, %v2260_v20  ;;  %v2249_v31 = vor.u32 %v2467_v30, %v2248_v22  ;;  %v2459_v43 = vld [vmem:[%s3261_s13 + $0x88] sm:$0xf0]  ;;  %v2328_v47 = vld [vmem:[%s3261_s13 + $0x158] sm:$0xf] }
 0x206   :  { %1648 = vmatpush.bf16.msra.mxu0 %v2301_v50  ;;  %1594 = vmatpush.bf16.msrb.mxu1 %v2165_v5  ;;  %v2329_v49 = vor.u32 %v2486_v48, %v2328_v47  ;;  %v2208_v50 = vld [vmem:[%s3261_s13 + $0x68] sm:$0xf]  ;;  %v2483_v27 = vld [vmem:[%s3261_s13 + $0x148] sm:$0xf0]  ;;  %v2184_v52 = vld [vmem:[%s3261_s13 + $0x38] sm:$0xf]  ;;  %v1185_v0 = vpop.f32.mrf.mxu2 }
 0x207   :  { %v2209_v56 = vor.u32 %v2456_v53, %v2208_v50  ;;  %v2304_v5 = vld [vmem:[%s3261_s13 + $0x128] sm:$0xf]  ;;  %v2450_v55 = vld [vmem:[%s3261_s13 + $0x40] sm:$0xf0]  ;;  %v2292_v16 = vld [vmem:[%s3261_s13 + $0x110] sm:$0xf] }
 0x208   :  { %1630 = vmatpush.bf16.msrb.mxu3 %v2193_v35  ;;  %v2220_v35 = vld [vmem:[%s3261_s13 + $0x80] sm:$0xf]  ;;  %v2474_v28 = vld [vmem:[%s3261_s13 + $0x100] sm:$0xf0]  ;;  %v2160_v13 = vld [vmem:[%s3261_s13 + $0x8] sm:$0xf] }
 0x209   :  { %1611 = vmatpush.bf16.msrb.mxu2 %v2285_v4  ;;  %v2221_v44 = vor.u32 %v2459_v43, %v2220_v35  ;;  %v2453_v4 = vld [vmem:[%s3261_s13 + $0x58] sm:$0xf0]  ;;  %v2172_v59 = vld [vmem:[%s3261_s13 + $0x20] sm:$0xf]  ;;  %v1245_v33 = vperm.slane %v1242_v11, 1 }
 0x20a   :  { %1649 = vmatpush.bf16.msra.mxu0 %v2289_v8  ;;  %1595 = vmatpush.bf16.msrb.mxu1 %v2153_v17  ;;  %v3147_v8 = vperm.slane %v1228_v63, 0  ;;  %v2197_v9 = vor.u32 %v2453_v4, %v2196_v54  ;;  %v2477_v17 = vld [vmem:[%s3261_s13 + $0x118] sm:$0xf0]  ;;  %v2268_v57 = vld [vmem:[%s3261_s13 + $0xe0] sm:$0xf] }
 0x20b   :  { %v2293_v20 = vor.u32 %v2477_v17, %v2292_v16 }
 0x20c   :  { %1631 = vmatpush.bf16.msrb.mxu3 %v2181_v2  ;;  %v2316_v2 = vld [vmem:[%s3261_s13 + $0x140] sm:$0xf] }
 0x20d   :  { %1612 = vmatpush.bf16.msrb.mxu2 %v2273_v12  ;;  %v2317_v3 = vor.u32 %v2483_v27, %v2316_v2  ;;  %v2185_v12 = vor.u32 %v2450_v55, %v2184_v52 }
 0x20e   :  { %1650 = vmatpush.bf16.msra.mxu0 %v2277_v14  ;;  %1664 = vmatpush.bf16.msra.mxu1 %v2245_v29  ;;  %v3165_v14 = vperm.slane %v1242_v11, 0 }
 0x20f   :  { %1165 = vmatmul.bf16.gmra.mxu1 %v958_v24  ;;  %1203 = vmatmul.bf16.gmra.mxu3 %v958_v24  ;;  %v2262_v24 = vld [vmem:[%s3261_s13 + $0xe4] sm:$0xf0] }
 0x210   :  { %1632 = vmatpush.bf16.msrb.mxu3 %v2169_v6  ;;  %v2265_v25 = vor.u32 %v2469_v21, %v2262_v24  ;;  %v2305_v6 = vor.u32 %v2480_v36, %v2304_v5  ;;  %v2447_v21 = vld [vmem:[%s3261_s13 + $0x28] sm:$0xf0]  ;;  %v1220_v24 = vpop.f32.mrf.mxu0 }
 0x211   :  { %1613 = vmatpush.bf16.msrb.mxu2 %v2261_v23  ;;  %v2280_v23 = vld [vmem:[%s3261_s13 + $0xf8] sm:$0xf] }
 0x212   :  { %1651 = vmatpush.bf16.msra.mxu0 %v2265_v25  ;;  %1665 = vmatpush.bf16.msra.mxu1 %v2233_v37  ;;  %v2173_v25 = vor.u32 %v2447_v21, %v2172_v59  ;;  %v2281_v61 = vor.u32 %v2474_v28, %v2280_v23 }
 0x214   :  { %1633 = vmatpush.bf16.msrb.mxu3 %v2157_v18 }
 0x215   :  { %1614 = vmatpush.bf16.msrb.mxu2 %v2249_v31 }
 0x216   :  { %1652 = vmatpush.bf16.msra.mxu0 %v2253_v34  ;;  %1666 = vmatpush.bf16.msra.mxu1 %v2221_v44 }
 0x218   :  { %2490 = vmatpush.bf16.msra.mxu3 %v2245_v29  ;;  %v2444_v29 = vld [vmem:[%s3261_s13 + $0x10] sm:$0xf0] }
 0x219   :  { %1683 = vmatpush.bf16.msra.mxu2 %v2341_v40  ;;  %v2161_v32 = vor.u32 %v2444_v29, %v2160_v13 }
 0x21a   :  { %1667 = vmatpush.bf16.msra.mxu1 %v2209_v56 }
 0x21c   :  { %2491 = vmatpush.bf16.msra.mxu3 %v2233_v37  ;;  %v2471_v37 = vld [vmem:[%s3261_s13 + $0xe8] sm:$0xf0] }
 0x21d   :  { %1684 = vmatpush.bf16.msra.mxu2 %v2329_v49 }
 0x21e   :  { %1668 = vmatpush.bf16.msra.mxu1 %v2197_v9 }
 0x220   :  { %2492 = vmatpush.bf16.msra.mxu3 %v2221_v44  ;;  %v2269_v44 = vor.u32 %v2471_v37, %v2268_v57 }
 0x221   :  { %1685 = vmatpush.bf16.msra.mxu2 %v2317_v3 }
 0x222   :  { %1669 = vmatpush.bf16.msra.mxu1 %v2185_v12 }
 0x224   :  { %2493 = vmatpush.bf16.msra.mxu3 %v2209_v56  ;;  %v2256_v56 = vld [vmem:[%s3261_s13 + $0xc8] sm:$0xf] }
 0x225   :  { %1686 = vmatpush.bf16.msra.mxu2 %v2305_v6 }
 0x226   :  { %1670 = vmatpush.bf16.msra.mxu1 %v2173_v25 }
 0x228   :  { %2494 = vmatpush.bf16.msra.mxu3 %v2197_v9 }
 0x229   :  { %1687 = vmatpush.bf16.msra.mxu2 %v2293_v20 }
 0x22a   :  { %1671 = vmatpush.bf16.msra.mxu1 %v2161_v32 }
 0x22c   :  { %2495 = vmatpush.bf16.msra.mxu3 %v2185_v12 }
 0x22d   :  { %1688 = vmatpush.bf16.msra.mxu2 %v2281_v61 }
 0x230   :  { %2496 = vmatpush.bf16.msra.mxu3 %v2173_v25 }
 0x231   :  { %1689 = vmatpush.bf16.msra.mxu2 %v2269_v44 }
 0x234   :  { %2497 = vmatpush.bf16.msra.mxu3 %v2161_v32 }
 0x27c   :  { %v1161_v62 = vpop.f32.mrf.mxu1 }
 0x27d   :  { %v1181_v7 = vadd.f32 %v1180_v19, %v1161_v62  ;;  %v1223_v62 = vpop.f32.mrf.mxu0 }
 0x27f   :  { %v1234_v60 = vmul.f32 %v3147_v8, %v1181_v7  ;;  %v1187_v7 = vpop.f32.mrf.mxu2 }
 0x281   :  { %v1248_v22 = vadd.f32 %v3165_v14, %v1234_v60 }
 0x282   :  { %v1199_v46 = vpop.f32.mrf.mxu3 }
 0x283   :  { %v1219_v58 = vadd.f32 %v1218_v41, %v1199_v46  ;;  %v1256_v40 = vmax.f32 %v1248_v22, 0.0  ;;  %v2468_v41 = vld [vmem:[%s3261_s13 + $0xd0] sm:$0xf0] }
 0x284   :  { %v1163_v1 = vpop.f32.mrf.mxu1  ;;  %v2257_v63 = vor.u32 %v2468_v41, %v2256_v56 }
 0x285   :  { %v1183_v18 = vadd.f32 %v1182_v10, %v1163_v1  ;;  %v1235_v31 = vmul.f32 %v3167_v51, %v1219_v58  ;;  %v1225_v55 = vpop.f32.mrf.mxu0 }
 0x286   :  { %1690 = vmatpush.bf16.msra.mxu2 %v2257_v63 }
 0x287   :  { %v1236_v30 = vmul.f32 %v3147_v8, %v1183_v18  ;;  %v1249_v47 = vadd.f32 %v1245_v33, %v1235_v31 }
 0x289   :  { %v1250_v34 = vadd.f32 %v3165_v14, %v1236_v30  ;;  %v1257_v2 = vmax.f32 %v1249_v47, 0.0 }
 0x28a   :  { %v1201_v39 = vpop.f32.mrf.mxu3 }
 0x28b   :  { %v1258_v19 = vmax.f32 %v1250_v34, 0.0  ;;  %v1221_v35 = vadd.f32 %v1220_v24, %v1201_v39 }
 0x28c   :  { %v1166_v43 = vpop.f32.mrf.mxu1 }
 0x28d   :  { %v1264_v48 = vpack.c.bf16 %v1258_v19, %v1256_v40  ;;  %v1237_v49 = vmul.f32 %v3167_v51, %v1221_v35  ;;  %v1186_v53 = vadd.f32 %v1185_v0, %v1166_v43 }
 0x28f   :  { %v1251_v50 = vadd.f32 %v1245_v33, %v1237_v49  ;;  %1596 = vmatmul.bf16.vlgmr.msrb.gmra.mxu1 %v1264_v48  ;;  %1634 = vmatmul.bf16.vlgmr.msrb.gmra.mxu3 %v1264_v48  ;;  %v1238_v4 = vmul.f32 %v3147_v8, %v1186_v53 }
 0x291   :  { %v1259_v27 = vmax.f32 %v1251_v50, 0.0  ;;  %v1252_v5 = vadd.f32 %v3165_v14, %v1238_v4 }
 0x292   :  { %v1204_v3 = vpop.f32.mrf.mxu3 }
 0x293   :  { %v1265_v54 = vpack.c.bf16 %v1259_v27, %v1257_v2  ;;  %v1224_v10 = vadd.f32 %v1223_v62, %v1204_v3  ;;  %v1260_v12 = vmax.f32 %v1252_v5, 0.0 }
 0x294   :  { %v1168_v9 = vpop.f32.mrf.mxu1 }
 0x295   :  { %v1188_v11 = vadd.f32 %v1187_v7, %v1168_v9  ;;  %1615 = vmatmul.bf16.vlgmr.msrb.gmra.mxu2 %v1265_v54  ;;  %1653 = vmatmul.bf16.vlgmr.msra.gmra.mxu0 %v1265_v54  ;;  %v1239_v6 = vmul.f32 %v3167_v51, %v1224_v10 }
 0x297   :  { %v1240_v36 = vmul.f32 %v3147_v8, %v1188_v11  ;;  %v1253_v16 = vadd.f32 %v1245_v33, %v1239_v6 }
 0x299   :  { %v1254_v52 = vadd.f32 %v3165_v14, %v1240_v36  ;;  %v1261_v20 = vmax.f32 %v1253_v16, 0.0 }
 0x29a   :  { %v1206_v46 = vpop.f32.mrf.mxu3 }
 0x29b   :  { %v1262_v60 = vmax.f32 %v1254_v52, 0.0  ;;  %v1226_v1 = vadd.f32 %v1225_v55, %v1206_v46 }
 0x29d   :  { %v1241_v17 = vmul.f32 %v3167_v51, %v1226_v1  ;;  %v1266_v58 = vpack.c.bf16 %v1262_v60, %v1260_v12 }
 0x29f   :  { %v1255_v18 = vadd.f32 %v1245_v33, %v1241_v17  ;;  %1601 = vmatmul.bf16.gmra.mxu1 %v1266_v58  ;;  %1639 = vmatmul.bf16.gmra.mxu3 %v1266_v58 }
 0x2a1   :  { %v1263_v59 = vmax.f32 %v1255_v18, 0.0 }
 0x2a3   :  { %v1267_v21 = vpack.c.bf16 %v1263_v59, %v1261_v20 }
 0x2a5   :  { %1620 = vmatmul.bf16.gmra.mxu2 %v1267_v21  ;;  %1658 = vmatmul.bf16.gmra.mxu0 %v1267_v21 }
 0x2af   :  { %1672 = vmatmul.bf16.vlgmr.msra.gmra.mxu1 %v1264_v48  ;;  %1677 = vmatmul.bf16.vlgmr.msra.gmra.mxu3 %v1266_v58 }
 0x2b5   :  { %1691 = vmatmul.bf16.vlgmr.msra.gmra.mxu2 %v1265_v54 }
 0x2c5   :  { %1696 = vmatmul.bf16.gmra.mxu2 %v1267_v21 }
 0x30c   :  { %v1597_v8 = vpop.f32.mrf.mxu1 }
 0x312   :  { %v1635_v24 = vpop.f32.mrf.mxu3  ;;  %v1654_v61 = vpop.f32.mrf.mxu0 }
 0x313   :  { %v1655_v48 = vadd.f32 %v1654_v61, %v1635_v24 }
 0x314   :  { %v1599_v14 = vpop.f32.mrf.mxu1 }
 0x318   :  { %v1616_v23 = vpop.f32.mrf.mxu2 }
 0x319   :  { %v1617_v34 = vadd.f32 %v1616_v23, %v1597_v8 }
 0x31a   :  { %v1637_v51 = vpop.f32.mrf.mxu3  ;;  %v1656_v39 = vpop.f32.mrf.mxu0 }
 0x31b   :  { %v1702_v37 = vrot.slane %v1617_v34, 7  ;;  %v1657_v10 = vadd.f32 %v1656_v39, %v1637_v51 }
 0x31c   :  { %v1602_v28 = vpop.f32.mrf.mxu1 }
 0x320   :  { %v1618_v25 = vpop.f32.mrf.mxu2 }
 0x321   :  { %v1619_v49 = vadd.f32 %v1618_v25, %v1599_v14 }
 0x322   :  { %v1640_v30 = vpop.f32.mrf.mxu3  ;;  %v1659_v3 = vpop.f32.mrf.mxu0 }
 0x323   :  { %v1703_v27 = vrot.slane %v1619_v49, 7  ;;  %v1660_v16 = vadd.f32 %v1659_v3, %v1640_v30 }
 0x324   :  { %v1604_v29 = vpop.f32.mrf.mxu1 }
 0x325   :  { %v1708_v7 = vsel %vm878_vm2, %v1702_v37, %v1703_v27 }
 0x326   :  { %v1715_v36 = vadd.f32 %v1708_v7, %v1657_v10 }
 0x328   :  { %v1621_v13 = vpop.f32.mrf.mxu2 }
 0x329   :  { %v1622_v41 = vadd.f32 %v1621_v13, %v1602_v28 }
 0x32a   :  { %v1642_v0 = vpop.f32.mrf.mxu3  ;;  %v1661_v60 = vpop.f32.mrf.mxu0 }
 0x32b   :  { %v1704_v54 = vrot.slane %v1622_v41, 7  ;;  %v1662_v18 = vadd.f32 %v1661_v60, %v1642_v0 }
 0x32c   :  { %v1673_v33 = vpop.f32.mrf.mxu1 }
 0x32d   :  { %v1707_v11 = vsel %vm878_vm2, %v1703_v27, %v1704_v54 }
 0x32e   :  { %v1712_v52 = vmul.f32 %v2854_v15, %v1707_v11 }
 0x330   :  { %v1623_v22 = vpop.f32.mrf.mxu2  ;;  %v1716_v20 = vadd.f32 %v1712_v52, %v1660_v16 }
 0x331   :  { %v1624_v31 = vadd.f32 %v1623_v22, %v1604_v29 }
 0x332   :  { %v1678_v63 = vpop.f32.mrf.mxu3 }
 0x333   :  { %v1705_v57 = vrot.slane %v1624_v31, 7 }
 0x334   :  { %v1675_v43 = vpop.f32.mrf.mxu1 }
 0x335   :  { %v1709_v40 = vsel %vm878_vm2, %v1705_v57, %v1702_v37  ;;  %v1706_v17 = vsel %vm878_vm2, %v1704_v54, %v1705_v57 }
 0x336   :  { %v1710_v35 = vmul.f32 %v2819_v42, %v1709_v40  ;;  %v1717_v59 = vadd.f32 %v1706_v17, %v1662_v18 }
 0x338   :  { %v1692_v32 = vpop.f32.mrf.mxu2  ;;  %v1714_v56 = vadd.f32 %v1710_v35, %v1655_v48 }
 0x339   :  { %v1693_v19 = vadd.f32 %v1692_v32, %v1673_v33 }
 0x33a   :  { %v1680_v55 = vpop.f32.mrf.mxu3 }
 0x33b   :  { %v1718_v50 = vrot.slane %v1693_v19, 1 }
 0x340   :  { %v1694_v44 = vpop.f32.mrf.mxu2 }
 0x341   :  { %v1695_v47 = vadd.f32 %v1694_v44, %v1675_v43 }
 0x343   :  { %v1719_v53 = vrot.slane %v1695_v47, 1 }
 0x345   :  { %v1724_v62 = vsel %vm895_vm3, %v1718_v50, %v1719_v53 }
 0x346   :  { %v1730_v2 = vadd.f32 %v1724_v62, %v1714_v56 }
 0x348   :  { %1734 = vst [vmem:[%s3262_s14] sm:$0xff] %v1730_v2  ;;  %v1697_v42 = vpop.f32.mrf.mxu2 }
 0x349   :  { %v1698_v4 = vadd.f32 %v1697_v42, %v1678_v63 }
 0x34b   :  { %v1720_v9 = vrot.slane %v1698_v4, 1 }
 0x34d   :  { %v1723_v5 = vsel %vm895_vm3, %v1719_v53, %v1720_v9 }
 0x34e   :  { %v1727_v6 = vmul.f32 %v2851_v38, %v1723_v5 }
 0x350   :  { %v1731_v46 = vadd.f32 %v1727_v6, %v1715_v36  ;;  %v1699_v12 = vpop.f32.mrf.mxu2 }
 0x351   :  { %v1700_v1 = vadd.f32 %v1699_v12, %v1680_v55 }
 0x352   :  { %1735 = vst [vmem:[%s3262_s14 + $0x18] sm:$0xff] %v1731_v46 }
 0x353   :  { %v1721_v58 = vrot.slane %v1700_v1, 1 }
 0x355   :  { %v1722_v38 = vsel %vm895_vm3, %v1720_v9, %v1721_v58  ;;  %v1725_v15 = vsel %vm895_vm3, %v1721_v58, %v1718_v50 }
 0x356   :  { %v1729_v21 = vmul.f32 %v2904_v45, %v1725_v15  ;;  %v1732_v8 = vadd.f32 %v1722_v38, %v1716_v20 }
 0x358   :  { %v1733_v14 = vadd.f32 %v1729_v21, %v1717_v59  ;;  %1736 = vst [vmem:[%s3262_s14 + $0x30] sm:$0xff] %v1732_v8 }
 0x35a   :  { %1737 = vst [vmem:[%s3262_s14 + $0x48] sm:$0xff] %v1733_v14 }
 0x35b   :  { %1742 = vsyncpa [#allocation3], 1 }
 0x35c   :  { %1743 = vsyncpa [#allocation5], 1 }

</bundles_post_ra>
